<compile_context>
chip_gen: v5e
topology: v5e:2x2
jax: 0.10.0
libtpu: 0.0.40
codegen_flags: <defaults>
</compile_context>

<pallas_src>
import math

import jax
import jax.numpy as jnp
from jax.experimental import pallas as pl
from jax.experimental.pallas import tpu as pltpu


# ----------------------------------------------------------------------------- helpers

def _round_up(x, m):
    return ((x + m - 1) // m) * m


def _size_bytes(shape, dtype):
    n = 1
    for d in shape:
        n *= d
    return n * jnp.dtype(dtype).itemsize


def _layernorm(v, w, b, eps=1e-5):
    mu = jnp.mean(v, axis=-1, keepdims=True)
    d = v - mu
    var = jnp.mean(d * d, axis=-1, keepdims=True)
    return d * jax.lax.rsqrt(var + eps) * w + b


# ----------------------------------------------------------------------------- kernel

def _make_text_encoder_kernel(num_heads, bb):
    """One (batch_block, layer) grid step: a full post-norm encoder layer on Bb rows.

    At l == 0 the activation scratch is loaded from the input block; at the last layer
    the output projection is applied and the result stored.  Weight refs carry exactly
    one layer (leading block dim of size 1, streamed over the layer grid axis).
    """

    def kernel(x_ref, mask_ref,
               wqkv_ref, bqkv_ref, wo_ref, bo_ref,
               ln1w_ref, ln1b_ref,
               w1_ref, b1_ref, w2_ref, b2_ref,
               ln2w_ref, ln2b_ref,
               wout_ref, bout_ref,
               o_ref, x_scr):
        l = pl.program_id(1)
        n_layers = pl.num_programs(1)

        @pl.when(l == 0)
        def _():
            x_scr[...] = x_ref[...]

        x = x_scr[...]                              # (Bb, S, E) f32
        Bb, S, E = x.shape
        H = num_heads
        Dh = E // H

        x2 = x.reshape(Bb * S, E)

        # --- self attention -----------------------------------------------------------
        # big-M QKV projection for all Bb rows at once (bf16 MXU, f32 accumulate).
        qkv = jnp.dot(x2.astype(jnp.bfloat16), wqkv_ref[0],
                      preferred_element_type=jnp.float32) + bqkv_ref[0]     # (Bb*S, 3E)

        ctx_rows = []
        for b in range(bb):                         # static loop over batch rows
            row = qkv[b * S:(b + 1) * S]            # (S, 3E), sublane-aligned slice
            # softmax scale already folded into the q columns of wqkv/bqkv at init.
            q = row[:, 0 * E:1 * E].reshape(S, H, Dh).transpose(1, 0, 2)    # (H, S, Dh)
            k = row[:, 1 * E:2 * E].reshape(S, H, Dh).transpose(1, 0, 2)
            v = row[:, 2 * E:3 * E].reshape(S, H, Dh).transpose(1, 0, 2)

            s = jnp.einsum('hqd,hkd->hqk',
                           q.astype(jnp.bfloat16), k.astype(jnp.bfloat16),
                           preferred_element_type=jnp.float32)              # (H, S, S)
            # additive key-padding bias (0 keep, -1e30 pad), f32
            bias = (mask_ref[b] - 1.0) * 1e30                               # (1, S)
            s = s + bias[None]
            s = s - jnp.max(s, axis=-1, keepdims=True)
            p = jnp.exp(s)
            p = p * pl.reciprocal(jnp.sum(p, axis=-1, keepdims=True), approx=True)
            # TODO(synk): for large S, tile this softmax flash-attention style instead
            # of materializing the (H, S, S) score tensor.
            ctx = jnp.einsum('hqk,hkd->hqd',
                             p.astype(jnp.bfloat16), v.astype(jnp.bfloat16),
                             preferred_element_type=jnp.float32)            # (H, S, Dh)
            ctx_rows.append(ctx.transpose(1, 0, 2).reshape(S, E))
        ctx2 = jnp.concatenate(ctx_rows, axis=0) if bb > 1 else ctx_rows[0]  # (Bb*S, E)

        attn = jnp.dot(ctx2.astype(jnp.bfloat16), wo_ref[0],
                       preferred_element_type=jnp.float32) + bo_ref[0]

        # residual + LayerNorm 1 (post-norm, PyTorch norm_first=False) -- f32 math
        h1 = _layernorm(x2 + attn, ln1w_ref[0], ln1b_ref[0])

        # --- feed forward (relu) --------------------------------------------------------
        ff = jnp.dot(h1.astype(jnp.bfloat16), w1_ref[0],
                     preferred_element_type=jnp.float32) + b1_ref[0]
        ff = jnp.maximum(ff, 0.0)
        ff = jnp.dot(ff.astype(jnp.bfloat16), w2_ref[0],
                     preferred_element_type=jnp.float32) + b2_ref[0]

        # residual + LayerNorm 2 -> carried activation for the next layer grid step
        xn = _layernorm(h1 + ff, ln2w_ref[0], ln2b_ref[0])
        x_scr[...] = xn.reshape(Bb, S, E)

        # --- final output projection (only at the last layer) ---------------------------
        @pl.when(l == n_layers - 1)
        def _():
            Hp = wout_ref.shape[-1]
            y = jnp.dot(xn.astype(jnp.bfloat16), wout_ref[...],
                        preferred_element_type=jnp.float32) + bout_ref[...]
            o_ref[...] = y.reshape(Bb, S, Hp)

    return kernel


# ----------------------------------------------------------------------------- wrapper

def text_encoder_pallas(x, attention_mask, layers, out_w, out_b,
                        num_heads, num_layers, *, block_b=8):
    B, S, E = x.shape
    Hd = out_w.shape[-1]

    # TPU-friendly padding: seq -> multiple of 8 (sublane), projection lane dim -> 128.
    Sp = max(_round_up(S, 8), 8)
    Hp = _round_up(Hd, 128)
    Bb = B if B <= block_b else block_b
    Bp = _round_up(B, Bb)

    xp = jnp.zeros((Bp, Sp, E), jnp.float32).at[:B, :S, :].set(x.astype(jnp.float32))
    maskp = (jnp.zeros((Bp, 1, Sp), jnp.float32)
             .at[:B, 0, :S].set(attention_mask.astype(jnp.float32)))

    wout = jnp.zeros((E, Hp), jnp.bfloat16).at[:, :Hd].set(out_w.astype(jnp.bfloat16))
    bout = (jnp.zeros((1, Hp), jnp.float32)
            .at[:, :Hd].set(out_b.reshape(1, Hd).astype(jnp.float32)))

    weights = [layers['wqkv'], layers['bqkv'], layers['wo'], layers['bo'],
               layers['ln1w'], layers['ln1b'], layers['w1'], layers['b1'],
               layers['w2'], layers['b2'], layers['ln2w'], layers['ln2b']]

    def layer_spec(w):                 # stream one layer's slab per grid step
        nz = w.ndim - 1
        return pl.BlockSpec((1,) + w.shape[1:],
                            lambda b, l, _nz=nz: (l,) + (0,) * _nz)

    def const_spec(w):                 # constant over the grid (fetched once)
        zeros = (0,) * w.ndim
        return pl.BlockSpec(w.shape, lambda b, l, _z=zeros: _z)

    in_specs = ([pl.BlockSpec((Bb, Sp, E), lambda b, l: (b, 0, 0)),
                 pl.BlockSpec((Bb, 1, Sp), lambda b, l: (b, 0, 0))]
                + [layer_spec(w) for w in weights]
                + [const_spec(wout), const_spec(bout)])
    out_spec = pl.BlockSpec((Bb, Sp, Hp), lambda b, l: (b, 0, 0))

    # VMEM budget: double-buffered per-layer weights + blocks + scratch + intermediates.
    per_layer = sum(_size_bytes((1,) + w.shape[1:], w.dtype) for w in weights)
    blocks = (_size_bytes((Bb, Sp, E), jnp.float32)       # x block
              + _size_bytes((Bb, 1, Sp), jnp.float32)     # mask block
              + _size_bytes((Bb, Sp, Hp), jnp.float32))   # out block
    consts = _size_bytes((E, Hp), jnp.bfloat16) + _size_bytes((1, Hp), jnp.float32)
    scratch = _size_bytes((Bb, Sp, E), jnp.float32)
    inter = Bb * (3 * num_heads * Sp * Sp * 4           # scores / probs
                  + 2 * Sp * 3 * E * 4                   # qkv copies
                  + 4 * Sp * max(E, Hp) * 4)             # ffn / proj temporaries
    est = 2 * (per_layer + consts + blocks) + scratch + inter
    vmem_limit = int(min(max(4 * est, 32 << 20), 64 << 20))

    kernel = _make_text_encoder_kernel(num_heads, Bb)
    out = pl.pallas_call(
        kernel,
        out_shape=jax.ShapeDtypeStruct((Bp, Sp, Hp), jnp.float32),
        grid=(Bp // Bb, num_layers),
        in_specs=in_specs,
        out_specs=out_spec,
        scratch_shapes=[pltpu.VMEM((Bb, Sp, E), jnp.float32)],
        compiler_params=pltpu.CompilerParams(
            dimension_semantics=("parallel", "arbitrary"),
            vmem_limit_bytes=vmem_limit),
    )(xp, maskp, *weights, wout, bout)

    return out[:B, :S, :Hd]


# ----------------------------------------------------------------------------- model

def make_positional_encoding(d_model, max_len):
    position = jnp.arange(max_len, dtype=jnp.float32)[:, None]
    div_term = jnp.exp(jnp.arange(0, d_model, 2, dtype=jnp.float32)
                       * (-math.log(10000.0) / d_model))
    pe = jnp.zeros((max_len, d_model), dtype=jnp.float32)
    pe = pe.at[:, 0::2].set(jnp.sin(position * div_term))
    pe = pe.at[:, 1::2].set(jnp.cos(position * div_term))
    return pe                                           # (max_len, d_model)


def init_params(key, config):
    V, E = config['vocab_size'], config['embed_dim']
    Hd = config['hidden_dim']
    L = config['num_layers']
    H = config['num_heads']
    scale = 1.0 / math.sqrt(E // H)

    def nrm(k, shape, s=0.02):
        return s * jax.random.normal(k, shape, dtype=jnp.float32)

    keys = jax.random.split(key, 2 + 4 * L)
    kq = keys[2:2 + L]
    ko = keys[2 + L:2 + 2 * L]
    k1 = keys[2 + 2 * L:2 + 3 * L]
    k2 = keys[2 + 3 * L:2 + 4 * L]

    # fold the softmax scale into the q third of wqkv / bqkv (removes in-kernel VALU mul)
    wqkv = jnp.stack([nrm(kq[l], (E, 3 * E)) for l in range(L)])
    wqkv = wqkv.at[:, :, :E].multiply(scale)
    bqkv = jnp.zeros((L, 1, 3 * E), jnp.float32).at[:, :, :E].multiply(scale)

    return {
        'embedding': nrm(keys[0], (V, E)),
        'pe': make_positional_encoding(E, config['max_seq_length']),
        # output projection pre-transposed to (in, out); padded/cast in the wrapper
        'out_w': nrm(keys[1], (E, Hd)),
        'out_b': jnp.zeros((1, Hd), jnp.float32),
        # per-layer weights stacked on a leading L axis, pre-transposed to (in, out);
        # matmul weights in bf16 (MXU operands), vectors / LN params in f32.
        'layers': {
            'wqkv': wqkv.astype(jnp.bfloat16),
            'bqkv': bqkv,
            'wo':   jnp.stack([nrm(ko[l], (E, E)) for l in range(L)]).astype(jnp.bfloat16),
            'bo':   jnp.zeros((L, 1, E), jnp.float32),
            'ln1w': jnp.ones((L, 1, E), jnp.float32),
            'ln1b': jnp.zeros((L, 1, E), jnp.float32),
            'w1':   jnp.stack([nrm(k1[l], (E, Hd)) for l in range(L)]).astype(jnp.bfloat16),
            'b1':   jnp.zeros((L, 1, Hd), jnp.float32),
            'w2':   jnp.stack([nrm(k2[l], (Hd, E)) for l in range(L)]).astype(jnp.bfloat16),
            'b2':   jnp.zeros((L, 1, E), jnp.float32),
            'ln2w': jnp.ones((L, 1, E), jnp.float32),
            'ln2b': jnp.zeros((L, 1, E), jnp.float32),
        },
    }


def text_encoder_forward(params, config, input_ids, attention_mask=None):
    B, S = input_ids.shape
    if attention_mask is None:
        attention_mask = jnp.ones((B, S), dtype=jnp.float32)
    attention_mask = attention_mask.astype(jnp.float32)

    # TODO(synk): embedding gather + PE add could be fused via PrefetchScalarGridSpec
    # row-gather; left in XLA since a gather has no rectangular BlockSpec.
    x = jnp.take(params['embedding'], input_ids, axis=0)          # (B, S, E)
    x = x + params['pe'][:S][None, :, :]

    out = text_encoder_pallas(x, attention_mask, params['layers'],
                              params['out_w'], params['out_b'],
                              config['num_heads'], config['num_layers'])
    # TODO(synk): dropout_layer omitted -- inference semantics (identity).
    return out                                                    # (B, S, hidden_dim)


# ----------------------------------------------------------------------------- main

if __name__ == "__main__":
    config = {
        'vocab_size': 100,
        'embed_dim': 32,
        'hidden_dim': 64,
        'num_heads': 4,
        'num_layers': 2,
        'max_seq_length': 16,
        'dropout': 0.1,
    }
    B, S = 2, 8

    key = jax.random.PRNGKey(0)
    k_param, k_ids = jax.random.split(key)
    params = init_params(k_param, config)

    input_ids = jax.random.randint(k_ids, (B, S), 0, config['vocab_size'], dtype=jnp.int32)
    attention_mask = jnp.ones((B, S), dtype=jnp.float32).at[1, 6:].set(0.0)

    out = text_encoder_forward(params, config, input_ids, attention_mask)
    out = jax.block_until_ready(out)
    assert out.shape == (B, S, config['hidden_dim'])
    assert bool(jnp.all(jnp.isfinite(out)))
    print("KERNEL_OK")
</pallas_src>

<mosaic_0001>
module attributes {stable_mosaic.version = 11 : i64} {
  func.func @kernel(%arg0: i32, %arg1: i32, %arg2: memref<2x8x32xf32, #tpu.memory_space<vmem>>, %arg3: memref<2x1x8xf32, #tpu.memory_space<vmem>>, %arg4: memref<1x32x96xbf16, #tpu.memory_space<vmem>>, %arg5: memref<1x1x96xf32, #tpu.memory_space<vmem>>, %arg6: memref<1x32x32xbf16, #tpu.memory_space<vmem>>, %arg7: memref<1x1x32xf32, #tpu.memory_space<vmem>>, %arg8: memref<1x1x32xf32, #tpu.memory_space<vmem>>, %arg9: memref<1x1x32xf32, #tpu.memory_space<vmem>>, %arg10: memref<1x32x64xbf16, #tpu.memory_space<vmem>>, %arg11: memref<1x1x64xf32, #tpu.memory_space<vmem>>, %arg12: memref<1x64x32xbf16, #tpu.memory_space<vmem>>, %arg13: memref<1x1x32xf32, #tpu.memory_space<vmem>>, %arg14: memref<1x1x32xf32, #tpu.memory_space<vmem>>, %arg15: memref<1x1x32xf32, #tpu.memory_space<vmem>>, %arg16: memref<32x128xbf16, #tpu.memory_space<vmem>>, %arg17: memref<1x128xf32, #tpu.memory_space<vmem>>, %arg18: memref<2x8x128xf32, #tpu.memory_space<vmem>>, %arg19: memref<2x8x32xf32, #tpu.memory_space<vmem>>) attributes {dimension_semantics = [#tpu.dimension_semantics<parallel>, #tpu.dimension_semantics<arbitrary>], iteration_bounds = array<i64: 1, 2>, scalar_prefetch = 0 : i64, scratch_operands = 1 : i64, tpu.core_type = #tpu.core_type<tc>, window_params = [{transform_indices = @transform_0, window_bounds = array<i64: 2, 8, 32>}, {transform_indices = @transform_1, window_bounds = array<i64: 2, 1, 8>}, {transform_indices = @transform_2, window_bounds = array<i64: 1, 32, 96>}, {transform_indices = @transform_3, window_bounds = array<i64: 1, 1, 96>}, {transform_indices = @transform_4, window_bounds = array<i64: 1, 32, 32>}, {transform_indices = @transform_5, window_bounds = array<i64: 1, 1, 32>}, {transform_indices = @transform_6, window_bounds = array<i64: 1, 1, 32>}, {transform_indices = @transform_7, window_bounds = array<i64: 1, 1, 32>}, {transform_indices = @transform_8, window_bounds = array<i64: 1, 32, 64>}, {transform_indices = @transform_9, window_bounds = array<i64: 1, 1, 64>}, {transform_indices = @transform_10, window_bounds = array<i64: 1, 64, 32>}, {transform_indices = @transform_11, window_bounds = array<i64: 1, 1, 32>}, {transform_indices = @transform_12, window_bounds = array<i64: 1, 1, 32>}, {transform_indices = @transform_13, window_bounds = array<i64: 1, 1, 32>}, {pipeline_mode = #tpu.pipeline_mode<synchronous>, transform_indices = @transform_14, window_bounds = array<i64: 32, 128>}, {pipeline_mode = #tpu.pipeline_mode<synchronous>, transform_indices = @transform_15, window_bounds = array<i64: 1, 128>}, {transform_indices = @transform_16, window_bounds = array<i64: 2, 8, 128>}]} {
    %c0_i32 = arith.constant 0 : i32
    %0 = arith.cmpi eq, %arg1, %c0_i32 : i32
    %1 = arith.extui %0 : i1 to i32
    %c0_i32_0 = arith.constant 0 : i32
    %2 = arith.cmpi ne, %1, %c0_i32_0 : i32
    scf.if %2 {
      %c0_74 = arith.constant 0 : index
      %c0_75 = arith.constant 0 : index
      %c0_76 = arith.constant 0 : index
      %169 = vector.load %arg2[%c0_74, %c0_75, %c0_76] : memref<2x8x32xf32, #tpu.memory_space<vmem>>, vector<2x8x32xf32>
      %c0_77 = arith.constant 0 : index
      %c0_78 = arith.constant 0 : index
      %c0_79 = arith.constant 0 : index
      %170 = vector.load %arg19[%c0_77, %c0_78, %c0_79] : memref<2x8x32xf32, #tpu.memory_space<vmem>>, vector<2x8x32xf32>
      tpu.vector_store %arg19[%c0_77, %c0_78, %c0_79], %169 {strides = array<i32>} : memref<2x8x32xf32, #tpu.memory_space<vmem>>, vector<2x8x32xf32>,
    } else {
    }
    %c0 = arith.constant 0 : index
    %c0_1 = arith.constant 0 : index
    %c0_2 = arith.constant 0 : index
    %3 = vector.load %arg19[%c0, %c0_1, %c0_2] : memref<2x8x32xf32, #tpu.memory_space<vmem>>, vector<2x8x32xf32>
    %4 = vector.shape_cast %3 : vector<2x8x32xf32> to vector<16x32xf32>
    %5 = arith.truncf %4 : vector<16x32xf32> to vector<16x32xbf16>
    %c0_3 = arith.constant 0 : index
    %c0_4 = arith.constant 0 : index
    %c0_5 = arith.constant 0 : index
    %6 = vector.load %arg4[%c0_3, %c0_4, %c0_5] : memref<1x32x96xbf16, #tpu.memory_space<vmem>>, vector<1x32x96xbf16>
    %7 = vector.shape_cast %6 : vector<1x32x96xbf16> to vector<32x96xbf16>
    %cst = arith.constant dense<0.000000e+00> : vector<16x96xf32>
    %8 = tpu.matmul %5, %7, %cst {dimension_numbers = #tpu.dot_dimension_numbers<[1], [0], [0], [1], [0, 0, 1, 1], [], []>} : vector<16x32xbf16>, vector<32x96xbf16>, vector<16x96xf32> -> vector<16x96xf32>
    %c0_6 = arith.constant 0 : index
    %c0_7 = arith.constant 0 : index
    %c0_8 = arith.constant 0 : index
    %9 = vector.load %arg5[%c0_6, %c0_7, %c0_8] : memref<1x1x96xf32, #tpu.memory_space<vmem>>, vector<1x1x96xf32>
    %10 = vector.shape_cast %9 : vector<1x1x96xf32> to vector<1x96xf32>
    %11 = vector.broadcast %10 : vector<1x96xf32> to vector<16x96xf32>
    %12 = arith.addf %8, %11 : vector<16x96xf32>
    %13 = vector.extract_strided_slice %12 {offsets = [0, 0], sizes = [8, 96], strides = [1, 1]} : vector<16x96xf32> to vector<8x96xf32>
    %14 = vector.extract_strided_slice %13 {offsets = [0, 0], sizes = [8, 32], strides = [1, 1]} : vector<8x96xf32> to vector<8x32xf32>
    %15 = vector.shape_cast %14 : vector<8x32xf32> to vector<8x4x8xf32>
    %16 = tpu.transpose %15, [1, 0, 2] : vector<8x4x8xf32> -> vector<4x8x8xf32>
    %17 = vector.extract_strided_slice %13 {offsets = [0, 32], sizes = [8, 32], strides = [1, 1]} : vector<8x96xf32> to vector<8x32xf32>
    %18 = vector.shape_cast %17 : vector<8x32xf32> to vector<8x4x8xf32>
    %19 = tpu.transpose %18, [1, 0, 2] : vector<8x4x8xf32> -> vector<4x8x8xf32>
    %20 = vector.extract_strided_slice %13 {offsets = [0, 64], sizes = [8, 32], strides = [1, 1]} : vector<8x96xf32> to vector<8x32xf32>
    %21 = vector.shape_cast %20 : vector<8x32xf32> to vector<8x4x8xf32>
    %22 = tpu.transpose %21, [1, 0, 2] : vector<8x4x8xf32> -> vector<4x8x8xf32>
    %23 = arith.truncf %16 : vector<4x8x8xf32> to vector<4x8x8xbf16>
    %24 = arith.truncf %19 : vector<4x8x8xf32> to vector<4x8x8xbf16>
    "tpu.trace_start"() <{level = 10 : i32, message = "hqd,hkd->hqk"}> : () -> ()
    %cst_9 = arith.constant dense<0.000000e+00> : vector<4x8x8xf32>
    %25 = tpu.matmul %23, %24, %cst_9 {dimension_numbers = #tpu.dot_dimension_numbers<[2], [2], [1], [1], [0, 0, 0, 1, 1, 1], [0], [0]>} : vector<4x8x8xbf16>, vector<4x8x8xbf16>, vector<4x8x8xf32> -> vector<4x8x8xf32>
    "tpu.trace_stop"() : () -> ()
    %c0_10 = arith.constant 0 : index
    %c0_11 = arith.constant 0 : index
    %c0_12 = arith.constant 0 : index
    %26 = vector.load %arg3[%c0_10, %c0_11, %c0_12] : memref<2x1x8xf32, #tpu.memory_space<vmem>>, vector<1x1x8xf32>
    %27 = vector.shape_cast %26 : vector<1x1x8xf32> to vector<1x8xf32>
    %cst_13 = arith.constant 1.000000e+00 : f32
    %28 = vector.broadcast %cst_13 : f32 to vector<1x8xf32>
    %29 = arith.subf %27, %28 : vector<1x8xf32>
    %cst_14 = arith.constant 1.000000e+30 : f32
    %30 = vector.broadcast %cst_14 : f32 to vector<1x8xf32>
    %31 = arith.mulf %29, %30 : vector<1x8xf32>
    %32 = vector.shape_cast %31 : vector<1x8xf32> to vector<1x1x8xf32>
    %33 = vector.broadcast %32 : vector<1x1x8xf32> to vector<4x8x8xf32>
    %34 = arith.addf %25, %33 : vector<4x8x8xf32>
    %cst_15 = arith.constant dense<0xFF800000> : vector<4x8xf32>
    %35 = vector.multi_reduction <maximumf>, %34, %cst_15 [2] : vector<4x8x8xf32> to vector<4x8xf32>
    %36 = vector.shape_cast %35 : vector<4x8xf32> to vector<4x8x1xf32>
    %37 = vector.broadcast %36 : vector<4x8x1xf32> to vector<4x8x8xf32>
    %38 = arith.subf %34, %37 : vector<4x8x8xf32>
    %39 = math.exp %38 : vector<4x8x8xf32>
    %cst_16 = arith.constant dense<0.000000e+00> : vector<4x8xf32>
    %40 = vector.multi_reduction <add>, %39, %cst_16 [2] : vector<4x8x8xf32> to vector<4x8xf32>
    %41 = vector.shape_cast %40 : vector<4x8xf32> to vector<4x8x1xf32>
    %42 = tpu.reciprocal %41 {approx = true} : vector<4x8x1xf32> -> vector<4x8x1xf32>
    %43 = vector.broadcast %42 : vector<4x8x1xf32> to vector<4x8x8xf32>
    %44 = arith.mulf %39, %43 : vector<4x8x8xf32>
    %45 = arith.truncf %44 : vector<4x8x8xf32> to vector<4x8x8xbf16>
    %46 = arith.truncf %22 : vector<4x8x8xf32> to vector<4x8x8xbf16>
    "tpu.trace_start"() <{level = 10 : i32, message = "hqk,hkd->hqd"}> : () -> ()
    %cst_17 = arith.constant dense<0.000000e+00> : vector<4x8x8xf32>
    %47 = tpu.matmul %45, %46, %cst_17 {dimension_numbers = #tpu.dot_dimension_numbers<[2], [1], [1], [2], [0, 0, 0, 1, 1, 2], [0], [0]>} : vector<4x8x8xbf16>, vector<4x8x8xbf16>, vector<4x8x8xf32> -> vector<4x8x8xf32>
    "tpu.trace_stop"() : () -> ()
    %48 = tpu.transpose %47, [1, 0, 2] : vector<4x8x8xf32> -> vector<8x4x8xf32>
    %49 = vector.shape_cast %48 : vector<8x4x8xf32> to vector<8x32xf32>
    %50 = vector.extract_strided_slice %12 {offsets = [8, 0], sizes = [8, 96], strides = [1, 1]} : vector<16x96xf32> to vector<8x96xf32>
    %51 = vector.extract_strided_slice %50 {offsets = [0, 0], sizes = [8, 32], strides = [1, 1]} : vector<8x96xf32> to vector<8x32xf32>
    %52 = vector.shape_cast %51 : vector<8x32xf32> to vector<8x4x8xf32>
    %53 = tpu.transpose %52, [1, 0, 2] : vector<8x4x8xf32> -> vector<4x8x8xf32>
    %54 = vector.extract_strided_slice %50 {offsets = [0, 32], sizes = [8, 32], strides = [1, 1]} : vector<8x96xf32> to vector<8x32xf32>
    %55 = vector.shape_cast %54 : vector<8x32xf32> to vector<8x4x8xf32>
    %56 = tpu.transpose %55, [1, 0, 2] : vector<8x4x8xf32> -> vector<4x8x8xf32>
    %57 = vector.extract_strided_slice %50 {offsets = [0, 64], sizes = [8, 32], strides = [1, 1]} : vector<8x96xf32> to vector<8x32xf32>
    %58 = vector.shape_cast %57 : vector<8x32xf32> to vector<8x4x8xf32>
    %59 = tpu.transpose %58, [1, 0, 2] : vector<8x4x8xf32> -> vector<4x8x8xf32>
    %60 = arith.truncf %53 : vector<4x8x8xf32> to vector<4x8x8xbf16>
    %61 = arith.truncf %56 : vector<4x8x8xf32> to vector<4x8x8xbf16>
    "tpu.trace_start"() <{level = 10 : i32, message = "hqd,hkd->hqk"}> : () -> ()
    %cst_18 = arith.constant dense<0.000000e+00> : vector<4x8x8xf32>
    %62 = tpu.matmul %60, %61, %cst_18 {dimension_numbers = #tpu.dot_dimension_numbers<[2], [2], [1], [1], [0, 0, 0, 1, 1, 1], [0], [0]>} : vector<4x8x8xbf16>, vector<4x8x8xbf16>, vector<4x8x8xf32> -> vector<4x8x8xf32>
    "tpu.trace_stop"() : () -> ()
    %c1 = arith.constant 1 : index
    %c0_19 = arith.constant 0 : index
    %c0_20 = arith.constant 0 : index
    %63 = vector.load %arg3[%c1, %c0_19, %c0_20] : memref<2x1x8xf32, #tpu.memory_space<vmem>>, vector<1x1x8xf32>
    %64 = vector.shape_cast %63 : vector<1x1x8xf32> to vector<1x8xf32>
    %cst_21 = arith.constant 1.000000e+00 : f32
    %65 = vector.broadcast %cst_21 : f32 to vector<1x8xf32>
    %66 = arith.subf %64, %65 : vector<1x8xf32>
    %cst_22 = arith.constant 1.000000e+30 : f32
    %67 = vector.broadcast %cst_22 : f32 to vector<1x8xf32>
    %68 = arith.mulf %66, %67 : vector<1x8xf32>
    %69 = vector.shape_cast %68 : vector<1x8xf32> to vector<1x1x8xf32>
    %70 = vector.broadcast %69 : vector<1x1x8xf32> to vector<4x8x8xf32>
    %71 = arith.addf %62, %70 : vector<4x8x8xf32>
    %cst_23 = arith.constant dense<0xFF800000> : vector<4x8xf32>
    %72 = vector.multi_reduction <maximumf>, %71, %cst_23 [2] : vector<4x8x8xf32> to vector<4x8xf32>
    %73 = vector.shape_cast %72 : vector<4x8xf32> to vector<4x8x1xf32>
    %74 = vector.broadcast %73 : vector<4x8x1xf32> to vector<4x8x8xf32>
    %75 = arith.subf %71, %74 : vector<4x8x8xf32>
    %76 = math.exp %75 : vector<4x8x8xf32>
    %cst_24 = arith.constant dense<0.000000e+00> : vector<4x8xf32>
    %77 = vector.multi_reduction <add>, %76, %cst_24 [2] : vector<4x8x8xf32> to vector<4x8xf32>
    %78 = vector.shape_cast %77 : vector<4x8xf32> to vector<4x8x1xf32>
    %79 = tpu.reciprocal %78 {approx = true} : vector<4x8x1xf32> -> vector<4x8x1xf32>
    %80 = vector.broadcast %79 : vector<4x8x1xf32> to vector<4x8x8xf32>
    %81 = arith.mulf %76, %80 : vector<4x8x8xf32>
    %82 = arith.truncf %81 : vector<4x8x8xf32> to vector<4x8x8xbf16>
    %83 = arith.truncf %59 : vector<4x8x8xf32> to vector<4x8x8xbf16>
    "tpu.trace_start"() <{level = 10 : i32, message = "hqk,hkd->hqd"}> : () -> ()
    %cst_25 = arith.constant dense<0.000000e+00> : vector<4x8x8xf32>
    %84 = tpu.matmul %82, %83, %cst_25 {dimension_numbers = #tpu.dot_dimension_numbers<[2], [1], [1], [2], [0, 0, 0, 1, 1, 2], [0], [0]>} : vector<4x8x8xbf16>, vector<4x8x8xbf16>, vector<4x8x8xf32> -> vector<4x8x8xf32>
    "tpu.trace_stop"() : () -> ()
    %85 = tpu.transpose %84, [1, 0, 2] : vector<4x8x8xf32> -> vector<8x4x8xf32>
    %86 = vector.shape_cast %85 : vector<8x4x8xf32> to vector<8x32xf32>
    %87 = tpu.concatenate %49, %86 in 0 : vector<8x32xf32>, vector<8x32xf32> -> vector<16x32xf32>
    %88 = arith.truncf %87 : vector<16x32xf32> to vector<16x32xbf16>
    %c0_26 = arith.constant 0 : index
    %c0_27 = arith.constant 0 : index
    %c0_28 = arith.constant 0 : index
    %89 = vector.load %arg6[%c0_26, %c0_27, %c0_28] : memref<1x32x32xbf16, #tpu.memory_space<vmem>>, vector<1x32x32xbf16>
    %90 = vector.shape_cast %89 : vector<1x32x32xbf16> to vector<32x32xbf16>
    %cst_29 = arith.constant dense<0.000000e+00> : vector<16x32xf32>
    %91 = tpu.matmul %88, %90, %cst_29 {dimension_numbers = #tpu.dot_dimension_numbers<[1], [0], [0], [1], [0, 0, 1, 1], [], []>} : vector<16x32xbf16>, vector<32x32xbf16>, vector<16x32xf32> -> vector<16x32xf32>
    %c0_30 = arith.constant 0 : index
    %c0_31 = arith.constant 0 : index
    %c0_32 = arith.constant 0 : index
    %92 = vector.load %arg7[%c0_30, %c0_31, %c0_32] : memref<1x1x32xf32, #tpu.memory_space<vmem>>, vector<1x1x32xf32>
    %93 = vector.shape_cast %92 : vector<1x1x32xf32> to vector<1x32xf32>
    %94 = vector.broadcast %93 : vector<1x32xf32> to vector<16x32xf32>
    %95 = arith.addf %91, %94 : vector<16x32xf32>
    %96 = arith.addf %4, %95 : vector<16x32xf32>
    %c0_33 = arith.constant 0 : index
    %c0_34 = arith.constant 0 : index
    %c0_35 = arith.constant 0 : index
    %97 = vector.load %arg8[%c0_33, %c0_34, %c0_35] : memref<1x1x32xf32, #tpu.memory_space<vmem>>, vector<1x1x32xf32>
    %98 = vector.shape_cast %97 : vector<1x1x32xf32> to vector<1x32xf32>
    %c0_36 = arith.constant 0 : index
    %c0_37 = arith.constant 0 : index
    %c0_38 = arith.constant 0 : index
    %99 = vector.load %arg9[%c0_36, %c0_37, %c0_38] : memref<1x1x32xf32, #tpu.memory_space<vmem>>, vector<1x1x32xf32>
    %100 = vector.shape_cast %99 : vector<1x1x32xf32> to vector<1x32xf32>
    %cst_39 = arith.constant dense<0.000000e+00> : vector<16xf32>
    %101 = vector.multi_reduction <add>, %96, %cst_39 [1] : vector<16x32xf32> to vector<16xf32>
    %102 = vector.shape_cast %101 : vector<16xf32> to vector<16x1xf32>
    %cst_40 = arith.constant 3.200000e+01 : f32
    %103 = vector.broadcast %cst_40 : f32 to vector<16x1xf32>
    %104 = arith.divf %102, %103 : vector<16x1xf32>
    %105 = vector.broadcast %104 : vector<16x1xf32> to vector<16x32xf32>
    %106 = arith.subf %96, %105 : vector<16x32xf32>
    %107 = arith.mulf %106, %106 : vector<16x32xf32>
    %cst_41 = arith.constant dense<0.000000e+00> : vector<16xf32>
    %108 = vector.multi_reduction <add>, %107, %cst_41 [1] : vector<16x32xf32> to vector<16xf32>
    %109 = vector.shape_cast %108 : vector<16xf32> to vector<16x1xf32>
    %cst_42 = arith.constant 3.200000e+01 : f32
    %110 = vector.broadcast %cst_42 : f32 to vector<16x1xf32>
    %111 = arith.divf %109, %110 : vector<16x1xf32>
    %cst_43 = arith.constant 9.99999974E-6 : f32
    %112 = vector.broadcast %cst_43 : f32 to vector<16x1xf32>
    %113 = arith.addf %111, %112 : vector<16x1xf32>
    %114 = math.rsqrt %113 : vector<16x1xf32>
    %115 = vector.broadcast %114 : vector<16x1xf32> to vector<16x32xf32>
    %116 = arith.mulf %106, %115 : vector<16x32xf32>
    %117 = vector.broadcast %98 : vector<1x32xf32> to vector<16x32xf32>
    %118 = arith.mulf %116, %117 : vector<16x32xf32>
    %119 = vector.broadcast %100 : vector<1x32xf32> to vector<16x32xf32>
    %120 = arith.addf %118, %119 : vector<16x32xf32>
    %121 = arith.truncf %120 : vector<16x32xf32> to vector<16x32xbf16>
    %c0_44 = arith.constant 0 : index
    %c0_45 = arith.constant 0 : index
    %c0_46 = arith.constant 0 : index
    %122 = vector.load %arg10[%c0_44, %c0_45, %c0_46] : memref<1x32x64xbf16, #tpu.memory_space<vmem>>, vector<1x32x64xbf16>
    %123 = vector.shape_cast %122 : vector<1x32x64xbf16> to vector<32x64xbf16>
    %cst_47 = arith.constant dense<0.000000e+00> : vector<16x64xf32>
    %124 = tpu.matmul %121, %123, %cst_47 {dimension_numbers = #tpu.dot_dimension_numbers<[1], [0], [0], [1], [0, 0, 1, 1], [], []>} : vector<16x32xbf16>, vector<32x64xbf16>, vector<16x64xf32> -> vector<16x64xf32>
    %c0_48 = arith.constant 0 : index
    %c0_49 = arith.constant 0 : index
    %c0_50 = arith.constant 0 : index
    %125 = vector.load %arg11[%c0_48, %c0_49, %c0_50] : memref<1x1x64xf32, #tpu.memory_space<vmem>>, vector<1x1x64xf32>
    %126 = vector.shape_cast %125 : vector<1x1x64xf32> to vector<1x64xf32>
    %127 = vector.broadcast %126 : vector<1x64xf32> to vector<16x64xf32>
    %128 = arith.addf %124, %127 : vector<16x64xf32>
    %cst_51 = arith.constant 0.000000e+00 : f32
    %129 = vector.broadcast %cst_51 : f32 to vector<16x64xf32>
    %130 = arith.maximumf %128, %129 : vector<16x64xf32>
    %131 = arith.truncf %130 : vector<16x64xf32> to vector<16x64xbf16>
    %c0_52 = arith.constant 0 : index
    %c0_53 = arith.constant 0 : index
    %c0_54 = arith.constant 0 : index
    %132 = vector.load %arg12[%c0_52, %c0_53, %c0_54] : memref<1x64x32xbf16, #tpu.memory_space<vmem>>, vector<1x64x32xbf16>
    %133 = vector.shape_cast %132 : vector<1x64x32xbf16> to vector<64x32xbf16>
    %cst_55 = arith.constant dense<0.000000e+00> : vector<16x32xf32>
    %134 = tpu.matmul %131, %133, %cst_55 {dimension_numbers = #tpu.dot_dimension_numbers<[1], [0], [0], [1], [0, 0, 1, 1], [], []>} : vector<16x64xbf16>, vector<64x32xbf16>, vector<16x32xf32> -> vector<16x32xf32>
    %c0_56 = arith.constant 0 : index
    %c0_57 = arith.constant 0 : index
    %c0_58 = arith.constant 0 : index
    %135 = vector.load %arg13[%c0_56, %c0_57, %c0_58] : memref<1x1x32xf32, #tpu.memory_space<vmem>>, vector<1x1x32xf32>
    %136 = vector.shape_cast %135 : vector<1x1x32xf32> to vector<1x32xf32>
    %137 = vector.broadcast %136 : vector<1x32xf32> to vector<16x32xf32>
    %138 = arith.addf %134, %137 : vector<16x32xf32>
    %139 = arith.addf %120, %138 : vector<16x32xf32>
    %c0_59 = arith.constant 0 : index
    %c0_60 = arith.constant 0 : index
    %c0_61 = arith.constant 0 : index
    %140 = vector.load %arg14[%c0_59, %c0_60, %c0_61] : memref<1x1x32xf32, #tpu.memory_space<vmem>>, vector<1x1x32xf32>
    %141 = vector.shape_cast %140 : vector<1x1x32xf32> to vector<1x32xf32>
    %c0_62 = arith.constant 0 : index
    %c0_63 = arith.constant 0 : index
    %c0_64 = arith.constant 0 : index
    %142 = vector.load %arg15[%c0_62, %c0_63, %c0_64] : memref<1x1x32xf32, #tpu.memory_space<vmem>>, vector<1x1x32xf32>
    %143 = vector.shape_cast %142 : vector<1x1x32xf32> to vector<1x32xf32>
    %cst_65 = arith.constant dense<0.000000e+00> : vector<16xf32>
    %144 = vector.multi_reduction <add>, %139, %cst_65 [1] : vector<16x32xf32> to vector<16xf32>
    %145 = vector.shape_cast %144 : vector<16xf32> to vector<16x1xf32>
    %cst_66 = arith.constant 3.200000e+01 : f32
    %146 = vector.broadcast %cst_66 : f32 to vector<16x1xf32>
    %147 = arith.divf %145, %146 : vector<16x1xf32>
    %148 = vector.broadcast %147 : vector<16x1xf32> to vector<16x32xf32>
    %149 = arith.subf %139, %148 : vector<16x32xf32>
    %150 = arith.mulf %149, %149 : vector<16x32xf32>
    %cst_67 = arith.constant dense<0.000000e+00> : vector<16xf32>
    %151 = vector.multi_reduction <add>, %150, %cst_67 [1] : vector<16x32xf32> to vector<16xf32>
    %152 = vector.shape_cast %151 : vector<16xf32> to vector<16x1xf32>
    %cst_68 = arith.constant 3.200000e+01 : f32
    %153 = vector.broadcast %cst_68 : f32 to vector<16x1xf32>
    %154 = arith.divf %152, %153 : vector<16x1xf32>
    %cst_69 = arith.constant 9.99999974E-6 : f32
    %155 = vector.broadcast %cst_69 : f32 to vector<16x1xf32>
    %156 = arith.addf %154, %155 : vector<16x1xf32>
    %157 = math.rsqrt %156 : vector<16x1xf32>
    %158 = vector.broadcast %157 : vector<16x1xf32> to vector<16x32xf32>
    %159 = arith.mulf %149, %158 : vector<16x32xf32>
    %160 = vector.broadcast %141 : vector<1x32xf32> to vector<16x32xf32>
    %161 = arith.mulf %159, %160 : vector<16x32xf32>
    %162 = vector.broadcast %143 : vector<1x32xf32> to vector<16x32xf32>
    %163 = arith.addf %161, %162 : vector<16x32xf32>
    %164 = vector.shape_cast %163 : vector<16x32xf32> to vector<2x8x32xf32>
    %c0_70 = arith.constant 0 : index
    %c0_71 = arith.constant 0 : index
    %c0_72 = arith.constant 0 : index
    %165 = vector.load %arg19[%c0_70, %c0_71, %c0_72] : memref<2x8x32xf32, #tpu.memory_space<vmem>>, vector<2x8x32xf32>
    tpu.vector_store %arg19[%c0_70, %c0_71, %c0_72], %164 {strides = array<i32>} : memref<2x8x32xf32, #tpu.memory_space<vmem>>, vector<2x8x32xf32>,
    %c1_i32 = arith.constant 1 : i32
    %166 = arith.cmpi eq, %arg1, %c1_i32 : i32
    %167 = arith.extui %166 : i1 to i32
    %c0_i32_73 = arith.constant 0 : i32
    %168 = arith.cmpi ne, %167, %c0_i32_73 : i32
    scf.if %168 {
      %169 = arith.truncf %163 : vector<16x32xf32> to vector<16x32xbf16>
      %c0_74 = arith.constant 0 : index
      %c0_75 = arith.constant 0 : index
      %170 = vector.load %arg16[%c0_74, %c0_75] : memref<32x128xbf16, #tpu.memory_space<vmem>>, vector<32x128xbf16>
      %cst_76 = arith.constant dense<0.000000e+00> : vector<16x128xf32>
      %171 = tpu.matmul %169, %170, %cst_76 {dimension_numbers = #tpu.dot_dimension_numbers<[1], [0], [0], [1], [0, 0, 1, 1], [], []>} : vector<16x32xbf16>, vector<32x128xbf16>, vector<16x128xf32> -> vector<16x128xf32>
      %c0_77 = arith.constant 0 : index
      %c0_78 = arith.constant 0 : index
      %172 = vector.load %arg17[%c0_77, %c0_78] : memref<1x128xf32, #tpu.memory_space<vmem>>, vector<1x128xf32>
      %173 = vector.broadcast %172 : vector<1x128xf32> to vector<16x128xf32>
      %174 = arith.addf %171, %173 : vector<16x128xf32>
      %175 = vector.shape_cast %174 : vector<16x128xf32> to vector<2x8x128xf32>
      %c0_79 = arith.constant 0 : index
      %c0_80 = arith.constant 0 : index
      %c0_81 = arith.constant 0 : index
      %176 = vector.load %arg18[%c0_79, %c0_80, %c0_81] : memref<2x8x128xf32, #tpu.memory_space<vmem>>, vector<2x8x128xf32>
      tpu.vector_store %arg18[%c0_79, %c0_80, %c0_81], %175 {strides = array<i32>} : memref<2x8x128xf32, #tpu.memory_space<vmem>>, vector<2x8x128xf32>,
    } else {
    }
    return
  }
  func.func @transform_0(%arg0: i32, %arg1: i32) -> (i32, i32, i32) {
    %c0_i32 = arith.constant 0 : i32
    %c0_i32_0 = arith.constant 0 : i32
    %c0_i32_1 = arith.constant 0 : i32
    return %arg0, %c0_i32, %c0_i32_0 : i32, i32, i32
  }
  func.func @transform_1(%arg0: i32, %arg1: i32) -> (i32, i32, i32) {
    %c0_i32 = arith.constant 0 : i32
    %c0_i32_0 = arith.constant 0 : i32
    %c0_i32_1 = arith.constant 0 : i32
    return %arg0, %c0_i32, %c0_i32_0 : i32, i32, i32
  }
  func.func @transform_2(%arg0: i32, %arg1: i32) -> (i32, i32, i32) {
    %c0_i32 = arith.constant 0 : i32
    %c0_i32_0 = arith.constant 0 : i32
    %c0_i32_1 = arith.constant 0 : i32
    return %arg1, %c0_i32, %c0_i32_0 : i32, i32, i32
  }
  func.func @transform_3(%arg0: i32, %arg1: i32) -> (i32, i32, i32) {
    %c0_i32 = arith.constant 0 : i32
    %c0_i32_0 = arith.constant 0 : i32
    %c0_i32_1 = arith.constant 0 : i32
    return %arg1, %c0_i32, %c0_i32_0 : i32, i32, i32
  }
  func.func @transform_4(%arg0: i32, %arg1: i32) -> (i32, i32, i32) {
    %c0_i32 = arith.constant 0 : i32
    %c0_i32_0 = arith.constant 0 : i32
    %c0_i32_1 = arith.constant 0 : i32
    return %arg1, %c0_i32, %c0_i32_0 : i32, i32, i32
  }
  func.func @transform_5(%arg0: i32, %arg1: i32) -> (i32, i32, i32) {
    %c0_i32 = arith.constant 0 : i32
    %c0_i32_0 = arith.constant 0 : i32
    %c0_i32_1 = arith.constant 0 : i32
    return %arg1, %c0_i32, %c0_i32_0 : i32, i32, i32
  }
  func.func @transform_6(%arg0: i32, %arg1: i32) -> (i32, i32, i32) {
    %c0_i32 = arith.constant 0 : i32
    %c0_i32_0 = arith.constant 0 : i32
    %c0_i32_1 = arith.constant 0 : i32
    return %arg1, %c0_i32, %c0_i32_0 : i32, i32, i32
  }
  func.func @transform_7(%arg0: i32, %arg1: i32) -> (i32, i32, i32) {
    %c0_i32 = arith.constant 0 : i32
    %c0_i32_0 = arith.constant 0 : i32
    %c0_i32_1 = arith.constant 0 : i32
    return %arg1, %c0_i32, %c0_i32_0 : i32, i32, i32
  }
  func.func @transform_8(%arg0: i32, %arg1: i32) -> (i32, i32, i32) {
    %c0_i32 = arith.constant 0 : i32
    %c0_i32_0 = arith.constant 0 : i32
    %c0_i32_1 = arith.constant 0 : i32
    return %arg1, %c0_i32, %c0_i32_0 : i32, i32, i32
  }
  func.func @transform_9(%arg0: i32, %arg1: i32) -> (i32, i32, i32) {
    %c0_i32 = arith.constant 0 : i32
    %c0_i32_0 = arith.constant 0 : i32
    %c0_i32_1 = arith.constant 0 : i32
    return %arg1, %c0_i32, %c0_i32_0 : i32, i32, i32
  }
  func.func @transform_10(%arg0: i32, %arg1: i32) -> (i32, i32, i32) {
    %c0_i32 = arith.constant 0 : i32
    %c0_i32_0 = arith.constant 0 : i32
    %c0_i32_1 = arith.constant 0 : i32
    return %arg1, %c0_i32, %c0_i32_0 : i32, i32, i32
  }
  func.func @transform_11(%arg0: i32, %arg1: i32) -> (i32, i32, i32) {
    %c0_i32 = arith.constant 0 : i32
    %c0_i32_0 = arith.constant 0 : i32
    %c0_i32_1 = arith.constant 0 : i32
    return %arg1, %c0_i32, %c0_i32_0 : i32, i32, i32
  }
  func.func @transform_12(%arg0: i32, %arg1: i32) -> (i32, i32, i32) {
    %c0_i32 = arith.constant 0 : i32
    %c0_i32_0 = arith.constant 0 : i32
    %c0_i32_1 = arith.constant 0 : i32
    return %arg1, %c0_i32, %c0_i32_0 : i32, i32, i32
  }
  func.func @transform_13(%arg0: i32, %arg1: i32) -> (i32, i32, i32) {
    %c0_i32 = arith.constant 0 : i32
    %c0_i32_0 = arith.constant 0 : i32
    %c0_i32_1 = arith.constant 0 : i32
    return %arg1, %c0_i32, %c0_i32_0 : i32, i32, i32
  }
  func.func @transform_14(%arg0: i32, %arg1: i32) -> (i32, i32) {
    %c0_i32 = arith.constant 0 : i32
    %c0_i32_0 = arith.constant 0 : i32
    %c0_i32_1 = arith.constant 0 : i32
    return %c0_i32, %c0_i32_0 : i32, i32
  }
  func.func @transform_15(%arg0: i32, %arg1: i32) -> (i32, i32) {
    %c0_i32 = arith.constant 0 : i32
    %c0_i32_0 = arith.constant 0 : i32
    %c0_i32_1 = arith.constant 0 : i32
    return %c0_i32, %c0_i32_0 : i32, i32
  }
  func.func @transform_16(%arg0: i32, %arg1: i32) -> (i32, i32, i32) {
    %c0_i32 = arith.constant 0 : i32
    %c0_i32_0 = arith.constant 0 : i32
    %c0_i32_1 = arith.constant 0 : i32
    return %arg0, %c0_i32, %c0_i32_0 : i32, i32, i32
  }
}

</mosaic_0001>

<bundles_post_ra>
// kernel: tpu_custom_call.1
= control target key start
LH: loop header
LB: loop body
LE: loop exit
PB: predicated region body
PF: predicated region fallthrough
CT: control target
= control target key end

     0   :  { %s4328_s0 = inlined_call_operand.hbm [shape: f32[2,8,32], index: 0, kind: input, shape index: {}]   ;;  %s4329_s1 = inlined_call_operand.hbm [shape: f32[2,1,8], index: 1, kind: input, shape index: {}]   ;;  %s4330_s2 = inlined_call_operand.vmem [shape: bf16[2,32,96], index: 2, kind: input, shape index: {}]   ;;  %s4331_s3 = inlined_call_operand.hbm [shape: f32[2,1,96], index: 3, kind: input, shape index: {}]   ;;  %s4332_s4 = inlined_call_operand.vmem [shape: bf16[2,32,32], index: 4, kind: input, shape index: {}]   ;;  %s4333_s5 = inlined_call_operand.vmem [shape: f32[2,1,32], index: 5, kind: input, shape index: {}]   ;;  %s4334_s6 = inlined_call_operand.vmem [shape: f32[2,1,32], index: 6, kind: input, shape index: {}]   ;;  %s4335_s7 = inlined_call_operand.hbm [shape: f32[2,1,32], index: 7, kind: input, shape index: {}]   ;;  %s4336_s8 = inlined_call_operand.vmem [shape: bf16[2,32,64], index: 8, kind: input, shape index: {}]   ;;  %s4337_s9 = inlined_call_operand.vmem [shape: f32[2,1,64], index: 9, kind: input, shape index: {}]   ;;  %s4338_s10 = inlined_call_operand.vmem [shape: bf16[2,64,32], index: 10, kind: input, shape index: {}]   ;;  %s4339_s11 = inlined_call_operand.vmem [shape: f32[2,1,32], index: 11, kind: input, shape index: {}]   ;;  %s4340_s12 = inlined_call_operand.vmem [shape: f32[2,1,32], index: 12, kind: input, shape index: {}]   ;;  %s4341_s13 = inlined_call_operand.hbm [shape: f32[2,1,32], index: 13, kind: input, shape index: {}]   ;;  %s4342_s14 = inlined_call_operand.hbm [shape: bf16[32,128], index: 14, kind: input, shape index: {}]   ;;  %s4343_s15 = inlined_call_operand.vmem [shape: f32[1,128], index: 15, kind: input, shape index: {}]   ;;  %s4344_s16 = inlined_call_operand.hbm [shape: f32[2,8,128], index: 16, kind: output, shape index: {}]  }
   0x1   :  { %4348 = sst [smem:[#allocation22_spill]] %s4328_s0 }
   0x2   :  { %4349 = sst [smem:[#allocation23_spill]] %s4329_s1 }
   0x3   :  { %4350 = sst [smem:[#allocation24_spill]] %s4330_s2 }
   0x4   :  { %4351 = sst [smem:[#allocation25_spill]] %s4331_s3 }
   0x5   :  { %4352 = sst [smem:[#allocation26_spill]] %s4332_s4 }
   0x6   :  { %4353 = sst [smem:[#allocation27_spill]] %s4335_s7 }
   0x7   :  { %4354 = sst [smem:[#allocation28_spill]] %s4336_s8 }
   0x8   :  { %4355 = sst [smem:[#allocation29_spill]] %s4337_s9 }
   0x9   :  { %4356 = sst [smem:[#allocation30_spill]] %s4338_s10 }
   0xa   :  { %4357 = sst [smem:[#allocation31_spill]] %s4339_s11 }
   0xb   :  { %4358 = sst [smem:[#allocation32_spill]] %s4340_s12 }
   0xc   :  { %4359 = sst [smem:[#allocation33_spill]] %s4341_s13 }
   0xd   :  { %4360 = sst [smem:[#allocation34_spill]] %s4342_s14 }
   0xe   :  { %4361 = sst [smem:[#allocation35_spill]] %s4343_s15 }
   0xf   :  { %4362 = sst [smem:[#allocation36_spill]] %s4344_s16 }
  0x10   :  { %21 = vsyncpa [#allocation4], 0 }
  0x11   :  { %22 = vsyncpa [#allocation7], 0 }
  0x12   :  { %23 = vsyncpa [#allocation5], 0  ;;  %s3543_s21 = smov 0   ;;  %s3545_s22 = smov 0  }
  0x13   :  { %s3547_s23 = smov 0   ;;  %s3549_s24 = smov 0  }
  0x14   :  { %s3551_s25 = smov 0   ;;  %s3553_s26 = smov 0  }
  0x15 LB: > { %4363 = sst [smem:[#allocation18_spill]] %s3422_s23  ;;  %s3572_s27 = sadd.s32 4294967295, %s3434_s26   ;;  %s3434_s26 = sphi %s3553_s26, %s29_s26   ;;  %s3430_s25 = sphi %s3551_s25, %s4402_s25   ;;  %s3426_s24 = sphi %s3549_s24, %s4401_s24   ;;  %s3422_s23 = sphi %s3547_s23, %s4397_s23   ;;  %s3418_s22 = sphi %s3545_s22, %s4400_s22   ;;  %s3414_s21 = sphi %s3543_s21, %s4399_s21  }
  0x16   : > { %4364 = sst [smem:[#allocation19_spill]] %s3434_s26  ;;  %p139_p0 = scmp.ne.s32.totalorder %s3418_s22, %s3414_s21 }
  0x17   : > { %p140_p1 = scmp.eq.s32.totalorder %s3572_s27, 0  ;;  %p2821_p2 = scmp.ge.s32.totalorder %s3434_s26, 1 }
  0x18   : > { %p478_p3 = scmp.lt.s32.totalorder %s3434_s26, 3  ;;  %s4366_s0 = sld [smem:[#allocation22_spill]] }
  0x19   : > { %p3580_p4 = por %p140_p1, %p139_p0  ;;  %s3436_s19 = smov [#allocation3]  }
  0x1a   : > { %p3587_p5 = pnand %p2821_p2, %p478_p3  ;;  %s494_s20 = sshll.u32 %s3436_s19, 4  ;;  %s495_s20 = int_to_ptr.vmem [resolvable:$true] %s494_s20 }
  0x1b   : > { %s3437_s29 = smov 128   ;;  %s3438_s30 = smov 8  }
  0x1c   : > { %p2953_p6 = pneg %p3587_p5  ;;  %s126_s16 = sadd.s32 1, %s3422_s23 }
  0x1d   : > { %p133_p9 = scmp.ne.s32.totalorder %s3422_s23, %s3418_s22  ;;  %p134_p10 = scmp.eq.s32.totalorder %s3434_s26, 0 }
  0x1e   : > { %s492_s17 = sshll.u32 %s4366_s0, 4  ;;  %p3595_p7 = pnand %p2953_p6, %p140_p1  ;;  %s493_s17 = int_to_ptr.hbm [resolvable:$true] %s492_s17 }
  0x1f   : > { %s38_s0 = sadd.s32 1, %s3430_s25  ;;  %p3608_p11 = por %p134_p10, %p133_p9 }
  0x20   : > { %2956 = dma.hbm_to_vmem [thread:$0]  (!%p3595_p7), %s493_s17, 256, %s495_s20, [#allocation4], %s3437_s29, %s3437_s29, %s3438_s30  }
  0x21   : > { %p39_p8 = scmp.ge.s32.totalorder %s38_s0, 2  ;;  %p2976_p12 = scmp.lt.s32.totalorder %s3434_s26, 2 }
  0x22   : > { %s549_s12 = sand.u32 1, %s3434_s26   ;;  %s3617_s11 = sand.u32 1, %s3422_s23  }
  0x23   : > { %s4404_s0 = smov (%p39_p8, %s38_s0), 0  ;;  %s4371_s3 = sld [smem:[#allocation25_spill]] }
  0x24   : > { %4369 = sst [smem:[#allocation20_spill]] %s4404_s0  ;;  %s123_s15 = ssub.s32 %s3430_s25, %s4404_s0 }
  0x25   : > { %p124_p13 = scmp.eq.s32.totalorder %s123_s15, 0  ;;  %s552_s9 = scalar_lea.vmem [#allocation8], %s3617_s11 }
  0x26   : > { %s559_s8 = sshll.u32 %s552_s9, 4  ;;  %p3629_p0 = pnand %p2976_p12, %p3608_p11  ;;  %s560_s8 = int_to_ptr.vmem [resolvable:$true] %s559_s8 }
  0x27   : > { %s3624_s30 = scalar_select %p124_p13, %s3422_s23, %s126_s16  }
  0x28   : > { %s4374_s1 = sld [smem:[#allocation23_spill]]  ;;  %s3636_s16 = scalar_lea.sflag [#allocation4], %s549_s12 }
  0x29   : > { %s555_s29 = scalar_lea.hbm %s4371_s3, %s3430_s25  ;;  %4372 = sst [smem:[#allocation21_spill]] %s3624_s30 }
  0x2a   : > { %s557_s10 = sshll.u32 %s555_s29, 4  ;;  %s3439_s9 = smov [#allocation6]   ;;  %s558_s10 = int_to_ptr.hbm [resolvable:$true] %s557_s10 }
  0x2b   : > { %2966 = dma.hbm_to_vmem [thread:$0]  (!%p3629_p0), %s558_s10, 16, %s560_s8, %s3636_s16  }
  0x2c   : > { %s510_s20 = sshll.u32 %s3439_s9, 4  ;;  %s3440_s19 = smov 16   ;;  %s511_s20 = int_to_ptr.vmem [resolvable:$true] %s510_s20 }
  0x2d   : > { %s3441_s29 = smov 1   ;;  %s4375_s7 = sld [smem:[#allocation27_spill]] }
  0x2e   : > { %s508_s17 = sshll.u32 %s4374_s1, 4  ;;  %s589_s1 = scalar_lea.vmem [#allocation9], %s3617_s11  ;;  %s509_s17 = int_to_ptr.hbm [resolvable:$true] %s508_s17 }
  0x2f   : > { %2959 = dma.hbm_to_vmem [thread:$0]  (!%p3595_p7), %s509_s17, 32, %s511_s20, [#allocation7], %s3440_s19, %s3440_s19, %s3441_s29  }
  0x30   : > { %s596_s30 = sshll.u32 %s589_s1, 4  ;;  %s4376_s14 = sld [smem:[#allocation34_spill]]  ;;  %s597_s30 = int_to_ptr.vmem [resolvable:$true] %s596_s30 }
  0x31   : > { %s3442_s17 = smov [#allocation11]   ;;  %s3443_s3 = smov 64  }
  0x32   : > { %s524_s20 = sshll.u32 %s3442_s17, 4  ;;  %s3444_s19 = smov 4   ;;  %s525_s20 = int_to_ptr.vmem [resolvable:$true] %s524_s20 }
  0x33   : > { %s592_s0 = scalar_lea.hbm %s4375_s7, %s3430_s25  ;;  %s4377_s13 = sld [smem:[#allocation33_spill]] }
  0x34   : > { %s594_s12 = sshll.u32 %s592_s0, 4  ;;  %s640_s0 = scalar_lea.vmem [#allocation10], %s3617_s11  ;;  %s595_s12 = int_to_ptr.hbm [resolvable:$true] %s594_s12 }
  0x35   : > { %2969 = dma.hbm_to_vmem [thread:$0]  (!%p3629_p0), %s595_s12, 16, %s597_s30, %s3636_s16  }
  0x36   : > { %s522_s9 = sshll.u32 %s4376_s14, 4  ;;  %s647_s7 = sshll.u32 %s640_s0, 4  ;;  %s523_s9 = int_to_ptr.hbm [resolvable:$true] %s522_s9  ;;  %s648_s7 = int_to_ptr.vmem [resolvable:$true] %s647_s7 }
  0x37   : > { %2962 = dma.hbm_to_vmem [thread:$0]  (!%p3595_p7), %s523_s9, 256, %s525_s20, [#allocation7], %s3443_s3, %s3443_s3, %s3444_s19  }
  0x38   : > { %656 = sbr.rel (%p3587_p5) target bundleno = 2715 (0xa9b), region = 84 }
  0x39   : > { %s643_s26 = scalar_lea.hbm %s4377_s13, %s3430_s25 }
  0x3a   : > { %s645_s23 = sshll.u32 %s643_s26, 4  ;;  %s646_s23 = int_to_ptr.hbm [resolvable:$true] %s645_s23 }
  0x3b   : > { %2972 = dma.hbm_to_vmem [thread:$0]  (!%p3629_p0), %s646_s23, 16, %s648_s7, %s3636_s16  }
  0x3d   : > { %3393 = dma.done.wait (%p140_p1), [#allocation4], 256  }
  0x3e   : > { %3395 = vsyncadd (%p140_p1), [#allocation4], 4294967040 }
  0x3f   : > { %3397 = dma.done.wait (%p140_p1), [#allocation7], 32  }
  0x40   : > { %3399 = vsyncadd (%p140_p1), [#allocation7], 4294967264  ;;  %s668_s11 = sand.u32 1, %s3572_s27   ;;  %s3676_s7 = sand.u32 1, %s3418_s22  }
  0x41   : > { %s669_s23 = scalar_lea.sflag [#allocation4], %s668_s11 }
  0x42   : > { %3401 = dma.done.wait (%p3580_p4), %s669_s23, 48  }
  0x43   : > { %3403 = vsyncadd (%p3580_p4), %s669_s23, 4294967248 }
  0x44   : > { %3405 = dma.done.wait (%p140_p1), [#allocation7], 256  }
  0x45   : > { %3407 = vsyncadd (%p140_p1), [#allocation7], 4294967040  ;;  %p783_p2 = scmp.lt.s32.totalorder %s3426_s24, 1  ;;  %s4378_s2 = sld [smem:[#allocation24_spill]] }
  0x46   : > { %s4379_s4 = sld [smem:[#allocation26_spill]]  ;;  %p2838_p1 = scmp.ne.s32.totalorder %s3426_s24, 0 }
  0x47   : > { %s3691_s15 = scalar_select %p783_p2, %s3426_s24, 1 }
  0x48   : > { %s4380_s23 = sld [smem:[#allocation28_spill]] }
  0x49   : > { %s2915_s28 = sshll.u32 %s3691_s15, 4  ;;  %s4381_s21 = sld [smem:[#allocation29_spill]] }
  0x4a   : > { %s2918_s10 = sshll.u32 %s3691_s15, 5  ;;  %s4383_s13 = sld [smem:[#allocation31_spill]] }
  0x4b   : > { %s787_s17 = scalar_lea.vmem %s4378_s2, %s2915_s28  ;;  %s4382_s2 = sld [smem:[#allocation30_spill]] }
  0x4c   : > { %s3704_s19 = scalar_lea.vmem %s4379_s4, %s2915_s28  ;;  %s4384_s14 = sld [smem:[#allocation32_spill]] }
  0x4e   : > { %s3713_s30 = scalar_lea.vmem %s4380_s23, %s2915_s28  ;;  %823 = sbr.rel (%p2838_p1) target bundleno = 86 (0x56), region = 112 }
  0x4f   : > { %s806_s8 = scalar_lea.vmem %s4381_s21, %s3691_s15 }
  0x50   : > { %s814_s29 = scalar_lea.vmem %s4383_s13, %s3691_s15 }
  0x51   : > { %s3723_s20 = scalar_lea.vmem %s4382_s2, %s2918_s10 }
  0x52   : > { %s817_s0 = scalar_lea.vmem %s4384_s14, %s3691_s15 }
  0x53   : > { %v824_v0 = vld [vmem:[#allocation3] sm:$0xff]  ;;  %vm826_vm0 = vcmask 261120   ;;  %v825_v1 = vld [vmem:[#allocation3 + $0x8] sm:$0xff] }
  0x54   : > { %827 = vst.msk [vmem:[#allocation2] sm:$0xff] %vm826_vm0, %v824_v0 }
  0x55   : > { %828 = vst.msk [vmem:[#allocation2 + $0x8] sm:$0xff] %vm826_vm0, %v825_v1 }
  0x56 PF: > { %v2920_v2 = vld [vmem:[%s787_s17 + $0x8] sm:$0xff]  ;;  %v2919_v3 = vld [vmem:[%s787_s17] sm:$0xff]  ;;  %vm852_vm1 = vcmask 261120   ;;  %s4385_s2 = scalar_lea.vmem [#allocation8], %s3676_s7  ;;  %s3445_s4 = smov 104   ;;  %vm881_vm2 = vcmask 1047556  }
  0x57   : > { %862 = vmatpush.bf16.msra.mxu0 %v2920_v2  ;;  %v3107_v7 = vld [vmem:[%s4385_s2] ss:$0 sm:$0xff]  ;;  %s3446_s13 = smov 120   ;;  %s3447_s14 = smov 112   ;;  %v3450_v17 = vmov 1983009808  }
  0x58   : > { %s3448_s18 = smov 96   ;;  %s3449_s21 = smov 64   ;;  %v886_v18 = vunpack.c.l.s4 %v3450_v17  ;;  %v3451_v31 = vmov 1934713408   ;;  %vm1249_vm3 = vcmask 64512   ;;  %vm1381_vm4 = vcmask 1043456  }
  0x59   : > { %v910_v32 = vunpack.c.l.s4 %v3451_v31  ;;  %s3452_s28 = smov 16   ;;  %s3453_s17 = smov 8   ;;  %vm1578_vm5 = vcmask 130048   ;;  %vm1580_vm6 = vcmask 195584   ;;  %vm2470_vm14 = vcmask 523264  }
  0x5a   : > { %v3749_v22 = vunpack.c.0.s8 %v886_v18  ;;  %s3454_s26 = smov 24   ;;  %s4386_s23 = scalar_lea.vmem %s4333_s5, %s3691_s15 }
  0x5b   : > { %v829_v4 = vld [vmem:[#allocation2] sm:$0xff]  ;;  %863 = vmatpush.bf16.msra.mxu0 %v2919_v3  ;;  %v3759_v37 = vunpack.c.0.s8 %v910_v32  ;;  %s4387_s12 = scalar_lea.vmem %s4334_s6, %s3691_s15  ;;  %s4388_s10 = scalar_lea.vmem [#allocation9], %s3676_s7 }
  0x5c   : > { %v830_v5 = vld [vmem:[#allocation2 + $0x8] sm:$0xff]  ;;  %p2901_p3 = scmp.ne.s32.totalorder %s3426_s24, 1 }
  0x5d   : > { %v831_v6 = vpack.c.bf16 %v830_v5, %v829_v4 }
  0x5f   : > { %2847 = vmatmul.msk.bf16.vlgmr.msra.gmra.mxu0 %vm852_vm1, %v831_v6 }
  0xdc   : > { %v865_v8 = vpop.f32.mrf.mxu0 }
  0xdd   : > { %v866_v9 = vadd.f32 %v3107_v7, %v865_v8 }
  0xdf   : > { %877 = vrot.lane.b32.xlu1 %v866_v9, %s3445_s4  ;;  %871 = vrot.lane.b32.xlu0 %v866_v9, %s3446_s13  ;;  %v883_v20 = vrot.slane %v866_v9, 4 }
  0xe4   : > { %v867_v12 = vpop.f32.mrf.mxu0 }
  0xe5   : > { %v3741_v15 = vadd.f32 %v3107_v7, %v867_v12 }
  0xe7   : > { %874 = vrot.lane.b32.xlu0 %v866_v9, %s3447_s14 }
 0x151   : > { %v872_v10 = vpop.permute.xlu0 %871  ;;  %v878_v13 = vpop.permute.xlu1 %877 }
 0x152   : > { %v3737_v11 = vpack.i.bf16 %v872_v10, %v866_v9  ;;  %v895_v23 = vrot.slane %v872_v10, 4  ;;  %v893_v26 = vrot.slane %v878_v13, 4 }
 0x154   : > { %3053 = vrot.lane.b32.xlu1 %v3737_v11, %s3448_s18  ;;  %v896_v28 = vsel %vm881_vm2, %v878_v13, %v895_v23  ;;  %v894_v30 = vsel %vm881_vm2, %v893_v26, %v872_v10 }
 0x155   : > { %v904_v33 = vperm.slane %v896_v28, %v3749_v22  ;;  %v900_v35 = vperm.slane %v894_v30, %v3749_v22 }
 0x157   : > { %v917_v40 = vrot.slane %v904_v33, 4  ;;  %v905_v42 = vrot.slane %v900_v35, 4 }
 0x159   : > { %v875_v14 = vpop.permute.xlu0 %874 }
 0x15a   : > { %v3067_v16 = vpack.i.bf16 %v878_v13, %v875_v14  ;;  %v880_v19 = vrot.slane %v875_v14, 4  ;;  %v884_v21 = vsel %vm881_vm2, %v875_v14, %v883_v20 }
 0x15b   : > { %v892_v25 = vperm.slane %v884_v21, %v3749_v22 }
 0x15c   : > { %1583 = vrot.lane.b32.xlu1 %v3741_v15, %s3446_s13  ;;  %3068 = vrot.lane.b32.xlu0 %v3067_v16, %s3449_s21  ;;  %v882_v24 = vsel %vm881_vm2, %v880_v19, %v866_v9 }
 0x15d   : > { %3058 = vrot.lane.b32.xlu2 %v3067_v16, %s3448_s18  ;;  %v888_v27 = vperm.slane %v882_v24, %v3749_v22  ;;  %v919_v29 = vrot.slane %v892_v25, 4  ;;  %v918_v43 = vsel %vm881_vm2, %v917_v40, %v892_v25 }
 0x15e   : > { %v924_v46 = vperm.slane %v918_v43, %v3759_v37 }
 0x15f   : > { %v907_v34 = vrot.slane %v888_v27, 4  ;;  %v920_v36 = vsel %vm881_vm2, %v904_v33, %v919_v29  ;;  %v906_v45 = vsel %vm881_vm2, %v905_v42, %v888_v27 }
 0x160   : > { %v928_v39 = vperm.slane %v920_v36, %v3759_v37  ;;  %v912_v48 = vperm.slane %v906_v45, %v3759_v37  ;;  %v933_v51 = vrot.slane %v924_v46, 4 }
 0x161   : > { %v908_v38 = vsel %vm881_vm2, %v900_v35, %v907_v34 }
 0x162   : > { %v916_v41 = vperm.slane %v908_v38, %v3759_v37  ;;  %v935_v44 = vrot.slane %v928_v39, 4  ;;  %v929_v54 = vrot.slane %v912_v48, 4  ;;  %v934_v58 = vsel %vm881_vm2, 0.0, %v933_v51 }
 0x164   : > { %1586 = vrot.lane.b32.xlu1 %v3741_v15, %s3447_s14  ;;  %v931_v47 = vrot.slane %v916_v41, 4  ;;  %v936_v49 = vsel %vm881_vm2, 0.0, %v935_v44  ;;  %v948_v52 = vsel %vm881_vm2, %v935_v44, %v924_v46  ;;  %v930_v63 = vsel %vm881_vm2, 0.0, %v929_v54  ;;  %s4392_s14 = scalar_lea.vmem [#allocation10], %s3676_s7 }
 0x165   : > { %v953_v53 = vrot.slane %v936_v49, 4  ;;  %v952_v59 = vperm.slane %v948_v52, %v3749_v22 }
 0x166   : > { %v932_v50 = vsel %vm881_vm2, 0.0, %v931_v47  ;;  %v937_v56 = vsel %vm881_vm2, %v931_v47, %v912_v48  ;;  %v1594_v47 = vrot.slane %v3741_v15, 4 }
 0x167   : > { %v942_v57 = vrot.slane %v932_v50, 4  ;;  %v954_v60 = vsel %vm881_vm2, %v953_v53, %v934_v58  ;;  %v941_v0 = vperm.slane %v937_v56, %v3749_v22  ;;  %v973_v4 = vrot.slane %v952_v59, 4 }
 0x168   : > { %v958_v3 = vperm.slane %v954_v60, %v3749_v22 }
 0x169   : > { %v943_v1 = vsel %vm881_vm2, %v942_v57, %v930_v63  ;;  %v961_v10 = vrot.slane %v941_v0, 4 }
 0x16a   : > { %v947_v9 = vperm.slane %v943_v1, %v3749_v22  ;;  %v974_v21 = vsel %vm881_vm2, %v958_v3, %v973_v4  ;;  %v971_v23 = vrot.slane %v958_v3, 4 }
 0x16b   : > { %v982_v36 = vperm.slane %v974_v21, %v3759_v37 }
 0x16c   : > { %1589 = vrot.lane.b32.xlu1 %v3741_v15, %s3445_s4  ;;  %v962_v28 = vsel %vm881_vm2, %v947_v9, %v961_v10  ;;  %v972_v38 = vsel %vm881_vm2, %v971_v23, %v952_v59  ;;  %v959_v42 = vrot.slane %v947_v9, 4 }
 0x16d   : > { %v970_v41 = vperm.slane %v962_v28, %v3759_v37  ;;  %v3805_v48 = vperm.slane %v972_v38, %v3759_v37  ;;  %v987_v52 = vrot.slane %v982_v36, 4 }
 0x16e   : > { %v960_v56 = vsel %vm881_vm2, %v959_v42, %v941_v0 }
 0x16f   : > { %v3826_v9 = vperm.slane %v960_v56, %v3759_v37 }
 0x171   : > { %v985_v28 = vrot.slane %v3826_v9, 4 }
 0x1b7   : > { %v3059_v55 = vpop.permute.xlu2 %3058 }
 0x1b8   : > { %v3061_v61 = vunpack.i.h.bf16 %v3059_v55  ;;  %v3060_v62 = vunpack.i.l.bf16 %v3059_v55  ;;  %v989_v55 = vrot.slane %v970_v41, 4 }
 0x1ba   : > { %v1015_v5 = vrot.slane %v3061_v61, 4  ;;  %v1003_v6 = vrot.slane %v3060_v62, 4 }
 0x1c6   : > { %v3054_v2 = vpop.permute.xlu1 %3053 }
 0x1c7   : > { %v3056_v7 = vunpack.i.h.bf16 %v3054_v2  ;;  %v3055_v8 = vunpack.i.l.bf16 %v3054_v2 }
 0x1c9   : > { %v1017_v12 = vrot.slane %v3056_v7, 4  ;;  %v1004_v13 = vsel %vm881_vm2, %v1003_v6, %v3055_v8  ;;  %v1005_v14 = vrot.slane %v3055_v8, 4  ;;  %v1016_v16 = vsel %vm881_vm2, %v1015_v5, %v3056_v7 }
 0x1ca   : > { %v1010_v17 = vperm.slane %v1004_v13, %v3749_v22  ;;  %v1022_v18 = vperm.slane %v1016_v16, %v3749_v22 }
 0x1cb   : > { %v1006_v19 = vsel %vm881_vm2, %v3060_v62, %v1005_v14  ;;  %v1018_v20 = vsel %vm881_vm2, %v3061_v61, %v1017_v12 }
 0x1cc   : > { %v1014_v24 = vperm.slane %v1006_v19, %v3749_v22  ;;  %v1026_v25 = vperm.slane %v1018_v20, %v3749_v22  ;;  %v1027_v26 = vrot.slane %v1022_v18, 4  ;;  %v1029_v27 = vrot.slane %v1010_v17, 4 }
 0x1cd   : > { %v983_v19 = vrot.slane %v3805_v48, 4 }
 0x1ce   : > { %v1028_v29 = vsel %vm881_vm2, %v1027_v26, %v1010_v17  ;;  %v1030_v30 = vsel %vm881_vm2, %v1022_v18, %v1029_v27  ;;  %v1039_v31 = vrot.slane %v1026_v25, 4  ;;  %v1041_v32 = vrot.slane %v1014_v24, 4  ;;  %v3792_v33 = vpop.permute.xlu1 %1583 }
 0x1cf   : > { %v1034_v34 = vperm.slane %v1028_v29, %v3759_v37  ;;  %v1038_v35 = vperm.slane %v1030_v30, %v3759_v37  ;;  %v3834_v17 = vsel %vm881_vm2, %v982_v36, %v989_v55  ;;  %v3837_v18 = vsel %vm881_vm2, %v987_v52, %v970_v41 }
 0x1d0   : > { %v1040_v39 = vsel %vm881_vm2, %v1039_v31, %v1014_v24  ;;  %v1042_v40 = vsel %vm881_vm2, %v1026_v25, %v1041_v32  ;;  %v1606_v29 = vrot.slane %v3792_v33, 4 }
 0x1d1   : > { %v1046_v43 = vperm.slane %v1040_v39, %v3759_v37  ;;  %v1050_v44 = vperm.slane %v1042_v40, %v3759_v37  ;;  %v1051_v45 = vrot.slane %v1034_v34, 4  ;;  %v1053_v46 = vrot.slane %v1038_v35, 4 }
 0x1d3   : > { %v1054_v49 = vsel %vm881_vm2, 0.0, %v1053_v46  ;;  %v1055_v50 = vrot.slane %v1046_v43, 4  ;;  %v1057_v51 = vrot.slane %v1050_v44, 4  ;;  %v1059_v53 = vsel %vm881_vm2, %v1053_v46, %v1034_v34 }
 0x1d4   : > { %v1064_v54 = vrot.slane %v1054_v49, 4  ;;  %v1052_v57 = vsel %vm881_vm2, 0.0, %v1051_v45  ;;  %v1063_v59 = vperm.slane %v1059_v53, %v3749_v22 }
 0x1d5   : > { %v1058_v58 = vsel %vm881_vm2, 0.0, %v1057_v51  ;;  %v1070_v60 = vsel %vm881_vm2, %v1057_v51, %v1046_v43  ;;  %v1056_v63 = vsel %vm881_vm2, 0.0, %v1055_v50 }
 0x1d6   : > { %v1075_v61 = vrot.slane %v1058_v58, 4  ;;  %v3814_v62 = vpop.permute.xlu1 %1586  ;;  %v1065_v1 = vsel %vm881_vm2, %v1064_v54, %v1052_v57  ;;  %v1074_v2 = vperm.slane %v1070_v60, %v3749_v22  ;;  %v1083_v5 = vrot.slane %v1063_v59, 4 }
 0x1d7   : > { %v1592_v3 = vrot.slane %v3814_v62, 4  ;;  %v1595_v0 = vsel %vm881_vm2, %v3814_v62, %v1594_v47  ;;  %v1069_v4 = vperm.slane %v1065_v1, %v3749_v22  ;;  %v986_v1 = vsel %vm881_vm2, %v3805_v48, %v985_v28 }
 0x1d8   : > { %v1603_v6 = vperm.slane %v1595_v0, %v3749_v22  ;;  %v1076_v7 = vsel %vm881_vm2, %v1075_v61, %v1056_v63  ;;  %v1095_v8 = vrot.slane %v1074_v2, 4 }
 0x1d9   : > { %v1593_v10 = vsel %vm881_vm2, %v1592_v3, %v3741_v15  ;;  %v1080_v12 = vperm.slane %v1076_v7, %v3749_v22  ;;  %v1084_v13 = vsel %vm881_vm2, %v1069_v4, %v1083_v5  ;;  %v1081_v14 = vrot.slane %v1069_v4, 4 }
 0x1da   : > { %v1092_v16 = vperm.slane %v1084_v13, %v3759_v37  ;;  %v1599_v20 = vperm.slane %v1593_v10, %v3749_v22  ;;  %v1630_v30 = vrot.slane %v1603_v6, 4  ;;  %v1238_v7 = vpack.c.bf16 %v3834_v17, %v3834_v17 }
 0x1db   : > { %v1096_v21 = vsel %vm881_vm2, %v1080_v12, %v1095_v8  ;;  %v1082_v23 = vsel %vm881_vm2, %v1081_v14, %v1063_v59  ;;  %v1093_v24 = vrot.slane %v1080_v12, 4 }
 0x1dc   : > { %v1104_v25 = vperm.slane %v1096_v21, %v3759_v37  ;;  %v1111_v26 = vrot.slane %v1092_v16, 4  ;;  %v1088_v27 = vperm.slane %v1082_v23, %v3759_v37  ;;  %v1618_v39 = vrot.slane %v1599_v20, 4 }
 0x1dd   : > { %v1094_v31 = vsel %vm881_vm2, %v1093_v24, %v1074_v2 }
 0x1de   : > { %v3848_v32 = vpop.permute.xlu1 %1589  ;;  %v1112_v34 = vsel %vm881_vm2, %v1104_v25, %v1111_v26  ;;  %v1100_v35 = vperm.slane %v1094_v31, %v3759_v37  ;;  %v1107_v36 = vrot.slane %v1088_v27, 4  ;;  %v1109_v38 = vrot.slane %v1104_v25, 4 }
 0x1df   : > { %v1604_v40 = vrot.slane %v3848_v32, 4  ;;  %v1607_v41 = vsel %vm881_vm2, %v3848_v32, %v1606_v29  ;;  %v1242_v42 = vpack.c.bf16 %v1112_v34, %v1112_v34 }
 0x1e0   : > { %v1615_v43 = vperm.slane %v1607_v41, %v3749_v22  ;;  %v1108_v44 = vsel %vm881_vm2, %v1100_v35, %v1107_v36  ;;  %v1110_v45 = vsel %vm881_vm2, %v1109_v38, %v1092_v16  ;;  %v1105_v46 = vrot.slane %v1100_v35, 4 }
 0x1e1   : > { %v1605_v47 = vsel %vm881_vm2, %v1604_v40, %v3792_v33  ;;  %v1311_v49 = vsel %vm1249_vm3, %v1242_v42, 0  ;;  %v1240_v50 = vpack.c.bf16 %v1108_v44, %v1108_v44  ;;  %v1241_v51 = vpack.c.bf16 %v1110_v45, %v1110_v45 }
 0x1e2   : > { %v1611_v52 = vperm.slane %v1605_v47, %v3749_v22  ;;  %v1628_v53 = vrot.slane %v1615_v43, 4  ;;  %v1631_v54 = vsel %vm881_vm2, %v1615_v43, %v1630_v30  ;;  %1320 = vmatpush.bf16.xpose.msrb.mxu0 %v1311_v49  ;;  %v1106_v55 = vsel %vm881_vm2, %v1105_v46, %v1088_v27 }
 0x1e3   : > { %v1639_v56 = vperm.slane %v1631_v54, %v3759_v37  ;;  %v1273_v57 = vsel %vm1249_vm3, %v1240_v50, 0  ;;  %v1292_v58 = vsel %vm1249_vm3, %v1241_v51, 0  ;;  %v1239_v59 = vpack.c.bf16 %v1106_v55, %v1106_v55  ;;  %v1243_v55 = vld [vmem:[#allocation6] sm:$0x1] }
 0x1e4   : > { %v1616_v60 = vrot.slane %v1611_v52, 4  ;;  %v1619_v61 = vsel %vm881_vm2, %v1611_v52, %v1618_v39  ;;  %v1629_v63 = vsel %vm881_vm2, %v1628_v53, %v1603_v6  ;;  %1282 = vmatpush.bf16.xpose.msra.mxu2 %v1273_v57  ;;  %1301 = vmatpush.bf16.xpose.msra.mxu3 %v1292_v58  ;;  %v1237_v6 = vpack.c.bf16 %v3837_v18, %v3837_v18 }
 0x1e5   : > { %v1627_v2 = vperm.slane %v1619_v61, %v3759_v37  ;;  %v1635_v3 = vperm.slane %v1629_v63, %v3759_v37  ;;  %v1646_v0 = vrot.slane %v1639_v56, 4  ;;  %v1254_v4 = vsel %vm1249_vm3, %v1239_v59, 0 }
 0x1e6   : > { %v1617_v5 = vsel %vm881_vm2, %v1616_v60, %v1599_v20  ;;  %1263 = vmatpush.bf16.xpose.msra.mxu1 %v1254_v4  ;;  %v1236_v16 = vpack.c.bf16 %v986_v1, %v986_v1  ;;  %v984_v20 = vsel %vm881_vm2, %v983_v19, %v3826_v9  ;;  %v2848_v56 = vadd.f32 -1.0, %v1243_v55 }
 0x1e7   : > { %v1623_v8 = vperm.slane %v1617_v5, %v3759_v37  ;;  %v1642_v10 = vrot.slane %v1627_v2, 4  ;;  %v1644_v48 = vrot.slane %v1635_v3, 4  ;;  %v1647_v12 = vsel %vm881_vm2, 0.0, %v1646_v0 }
 0x1e8   : > { %v1659_v13 = vsel %vm881_vm2, %v1646_v0, %v1635_v3  ;;  %v1664_v14 = vrot.slane %v1647_v12, 4  ;;  %v1235_v19 = vpack.c.bf16 %v984_v20, %v984_v20  ;;  %v1245_v57 = vmul.f32 1e+30, %v2848_v56 }
 0x1e9   : > { %v1640_v21 = vrot.slane %v1623_v8, 4  ;;  %v1643_v23 = vsel %vm881_vm2, 0.0, %v1642_v10  ;;  %v1645_v17 = vsel %vm881_vm2, 0.0, %v1644_v48  ;;  %v1648_v18 = vsel %vm881_vm2, %v1642_v10, %v1623_v8  ;;  %2852 = vmatmul.msk.bf16.vlgmr.msrb.gmra.mxu0 %vm1249_vm3, %v1238_v7 }
 0x1ea   : > { %v1653_v24 = vrot.slane %v1643_v23, 4  ;;  %v1663_v25 = vperm.slane %v1659_v13, %v3749_v22  ;;  %v1665_v26 = vsel %vm881_vm2, %v1664_v14, %v1645_v17  ;;  %v1652_v27 = vperm.slane %v1648_v18, %v3749_v22 }
 0x1eb   : > { %v1641_v28 = vsel %vm881_vm2, 0.0, %v1640_v21  ;;  %v1669_v9 = vperm.slane %v1665_v26, %v3749_v22  ;;  %2850 = vmatmul.msk.bf16.vlgmr.msra.gmra.mxu2 %vm1249_vm3, %v1236_v16  ;;  %2851 = vmatmul.msk.bf16.vlgmr.msra.gmra.mxu3 %vm1249_vm3, %v1237_v6  ;;  %v1247_v58 = vperm.slane %v1245_v57, 0  ;;  %v3924_v13 = vpack.i.bf16 %v3792_v33, %v3741_v15  ;;  %v3069_v16 = vpop.permute.xlu0 %3068 }
 0x1ec   : > { %v1654_v29 = vsel %vm881_vm2, %v1653_v24, %v1641_v28  ;;  %v1684_v30 = vrot.slane %v1663_v25, 4  ;;  %v1672_v31 = vrot.slane %v1652_v27, 4  ;;  %v3932_v14 = vpack.i.bf16 %v3848_v32, %v3814_v62 }
 0x1ed   : > { %v1682_v34 = vrot.slane %v1669_v9, 4  ;;  %2849 = vmatmul.msk.bf16.vlgmr.msra.gmra.mxu1 %vm1249_vm3, %v1235_v19  ;;  %v1658_v35 = vperm.slane %v1654_v29, %v3749_v22  ;;  %v3070_v28 = vunpack.i.l.bf16 %v3069_v16 }
 0x1ee   : > { %v1685_v36 = vsel %vm881_vm2, %v1669_v9, %v1684_v30 }
 0x1ef   : > { %v1670_v38 = vrot.slane %v1658_v35, 4  ;;  %v1683_v39 = vsel %vm881_vm2, %v1682_v34, %v1663_v25  ;;  %v1673_v40 = vsel %vm881_vm2, %v1658_v35, %v1672_v31  ;;  %v1693_v41 = vperm.slane %v1685_v36, %v3759_v37 }
 0x1f0   : > { %v1689_v42 = vperm.slane %v1683_v39, %v3759_v37  ;;  %v1681_v43 = vperm.slane %v1673_v40, %v3759_v37  ;;  %v1125_v30 = vrot.slane %v3070_v28, 4 }
 0x1f1   : > { %v1671_v44 = vsel %vm881_vm2, %v1670_v38, %v1652_v27  ;;  %v1698_v45 = vrot.slane %v1693_v41, 4  ;;  %v3071_v27 = vunpack.i.h.bf16 %v3069_v16 }
 0x1f2   : > { %v1677_v46 = vperm.slane %v1671_v44, %v3759_v37  ;;  %v1694_v47 = vrot.slane %v1689_v42, 4  ;;  %v1700_v49 = vrot.slane %v1681_v43, 4 }
 0x1f3   : > { %v3907_v50 = vsel %vm881_vm2, %v1698_v45, %v1681_v43  ;;  %v1137_v9 = vrot.slane %v3071_v27, 4 }
 0x1f4   : > { %v3910_v51 = vsel %vm881_vm2, %v1694_v47, %v1677_v46  ;;  %v1696_v52 = vrot.slane %v1677_v46, 4  ;;  %v3913_v53 = vsel %vm881_vm2, %v1693_v41, %v1700_v49 }
 0x1f6   : > { %v3916_v54 = vsel %vm881_vm2, %v1689_v42, %v1696_v52 }
 0x266   : > { %v1322_v59 = vpop.f32.mrf.mxu0 }
 0x267   : > { %v1323_v60 = vadd.f32 %v1322_v59, %v1247_v58 }
 0x269   : > { %v1335_v61 = vsel %vm1249_vm3, %v1323_v60, -inf }
 0x26a   : > { %1336 = vmax.xlane.f32.xlu2 %v1335_v61  ;;  %v1265_v63 = vpop.f32.mrf.mxu1 }
 0x26b   : > { %v1266_v1 = vadd.f32 %v1265_v63, %v1247_v58 }
 0x26d   : > { %v1326_v2 = vsel %vm1249_vm3, %v1266_v1, -inf }
 0x26e   : > { %v1284_v3 = vpop.f32.mrf.mxu2  ;;  %v1303_v0 = vpop.f32.mrf.mxu3  ;;  %1327 = vmax.xlane.f32.xlu1 %v1326_v2 }
 0x26f   : > { %v1285_v4 = vadd.f32 %v1284_v3, %v1247_v58  ;;  %v1304_v5 = vadd.f32 %v1303_v0, %v1247_v58  ;;  %v1324_v7 = vpop.f32.mrf.mxu0 }
 0x271   : > { %v1332_v6 = vsel %vm1249_vm3, %v1304_v5, -inf  ;;  %v1329_v8 = vsel %vm1249_vm3, %v1285_v4, -inf }
 0x272   : > { %1333 = vmax.xlane.f32.xlu2 %v1332_v6  ;;  %1330 = vmax.xlane.f32.xlu0 %v1329_v8  ;;  %v1267_v10 = vpop.f32.mrf.mxu1 }
 0x276   : > { %v1286_v48 = vpop.f32.mrf.mxu2  ;;  %v1305_v12 = vpop.f32.mrf.mxu3 }
 0x286   : > { %3073 = vrot.lane.b32.xlu0 %v3924_v13, %s3448_s18 }
 0x28a   : > { %3063 = vrot.lane.b32.xlu2 %v3737_v11, %s3449_s21 }
 0x292   : > { %3078 = vrot.lane.b32.xlu2 %v3932_v14, %s3448_s18 }
 0x2dd   : > { %v1337_v20 = vpop.xlane.xlu2 %1336 }
 0x2de   : > { %v1341_v18 = vsub.f32 %v1323_v60, %v1337_v20 }
 0x2e0   : > { %v1348_v62 = vmul.f32 1.442695, %v1341_v18 }
 0x2e1   : > { %v1328_v21 = vpop.xlane.xlu1 %1327 }
 0x2e2   : > { %v1338_v23 = vsub.f32 %v1266_v1, %v1328_v21 }
 0x2e4   : > { %v1342_v17 = vmul.f32 1.442695, %v1338_v23 }
 0x2e5   : > { %v1334_v15 = vpop.xlane.xlu2 %1333  ;;  %v1331_v33 = vpop.xlane.xlu0 %1330 }
 0x2e6   : > { %3115 = vpow2.f32 %v1342_v17  ;;  %v1340_v24 = vsub.f32 %v1304_v5, %v1334_v15  ;;  %v1339_v25 = vsub.f32 %v1285_v4, %v1331_v33 }
 0x2e8   : > { %v1346_v26 = vmul.f32 1.442695, %v1340_v24  ;;  %v1344_v11 = vmul.f32 1.442695, %v1339_v25 }
 0x2ea   : > { %3117 = vpow2.f32 %v1346_v26 }
 0x2eb   : > { %3119 = vpow2.f32 %v1344_v11 }
 0x2ec   : > { %v3936_v32 = vpop.eup %3115  ;;  %3121 = vpow2.f32 %v1348_v62 }
 0x2ed   : > { %v3064_v19 = vpop.permute.xlu2 %3063  ;;  %v1350_v29 = vsel %vm1249_vm3, %v3936_v32, 0.0 }
 0x2ee   : > { %v3066_v31 = vunpack.i.h.bf16 %v3064_v19  ;;  %v3065_v34 = vunpack.i.l.bf16 %v3064_v19  ;;  %1351 = vadd.xlane.f32.xlu2 %v1350_v29 }
 0x2f0   : > { %v3940_v35 = vpop.eup %3117  ;;  %v1138_v36 = vsel %vm881_vm2, %v1137_v9, %v3066_v31  ;;  %v1139_v38 = vrot.slane %v3066_v31, 4  ;;  %v1126_v39 = vsel %vm881_vm2, %v1125_v30, %v3065_v34  ;;  %v1127_v40 = vrot.slane %v3065_v34, 4 }
 0x2f1   : > { %v3944_v41 = vpop.eup %3119  ;;  %v1144_v42 = vperm.slane %v1138_v36, %v3749_v22  ;;  %v1132_v43 = vperm.slane %v1126_v39, %v3749_v22  ;;  %v1356_v44 = vsel %vm1249_vm3, %v3940_v35, 0.0 }
 0x2f2   : > { %v1140_v45 = vsel %vm881_vm2, %v3071_v27, %v1139_v38  ;;  %v1128_v46 = vsel %vm881_vm2, %v3070_v28, %v1127_v40  ;;  %v1353_v47 = vsel %vm1249_vm3, %v3944_v41, 0.0  ;;  %1357 = vadd.xlane.f32.xlu1 %v1356_v44  ;;  %v3956_v57 = vpop.eup %3121 }
 0x2f3   : > { %v1148_v49 = vperm.slane %v1140_v45, %v3749_v22  ;;  %v1149_v52 = vrot.slane %v1144_v42, 4  ;;  %v1136_v55 = vperm.slane %v1128_v46, %v3749_v22  ;;  %v1151_v56 = vrot.slane %v1132_v43, 4  ;;  %1354 = vadd.xlane.f32.xlu0 %v1353_v47 }
 0x2f4   : > { %v1359_v7 = vsel %vm1249_vm3, %v3956_v57, 0.0 }
 0x2f5   : > { %v1161_v58 = vrot.slane %v1148_v49, 4  ;;  %v1150_v59 = vsel %vm881_vm2, %v1149_v52, %v1132_v43  ;;  %v1152_v60 = vsel %vm881_vm2, %v1144_v42, %v1151_v56  ;;  %v1163_v61 = vrot.slane %v1136_v55, 4  ;;  %v3079_v63 = vpop.permute.xlu2 %3078 }
 0x2f6   : > { %v1156_v1 = vperm.slane %v1150_v59, %v3759_v37  ;;  %v1160_v2 = vperm.slane %v1152_v60, %v3759_v37  ;;  %v3081_v3 = vunpack.i.h.bf16 %v3079_v63  ;;  %v3080_v0 = vunpack.i.l.bf16 %v3079_v63 }
 0x2f7   : > { %v1162_v4 = vsel %vm881_vm2, %v1161_v58, %v1136_v55  ;;  %v1164_v5 = vsel %vm881_vm2, %v1148_v49, %v1163_v61 }
 0x2f8   : > { %v1168_v6 = vperm.slane %v1162_v4, %v3759_v37  ;;  %v1172_v8 = vperm.slane %v1164_v5, %v3759_v37  ;;  %v1173_v10 = vrot.slane %v1156_v1, 4  ;;  %v1175_v48 = vrot.slane %v1160_v2, 4  ;;  %v3074_v12 = vpop.permute.xlu0 %3073 }
 0x2f9   : > { %v1726_v16 = vrot.slane %v3081_v3, 4  ;;  %v1714_v20 = vrot.slane %v3080_v0, 4  ;;  %v3076_v21 = vunpack.i.h.bf16 %v3074_v12  ;;  %v3075_v23 = vunpack.i.l.bf16 %v3074_v12 }
 0x2fa   : > { %v1174_v17 = vsel %vm881_vm2, 0.0, %v1173_v10  ;;  %v1176_v15 = vsel %vm881_vm2, 0.0, %v1175_v48  ;;  %v1177_v33 = vrot.slane %v1168_v6, 4  ;;  %v1179_v18 = vrot.slane %v1172_v8, 4  ;;  %1360 = vadd.xlane.f32.xlu1 %v1359_v7 }
 0x2fb   : > { %v1181_v24 = vsel %vm881_vm2, %v1175_v48, %v1156_v1  ;;  %v1186_v25 = vrot.slane %v1176_v15, 4  ;;  %v1727_v26 = vsel %vm881_vm2, %v1726_v16, %v3076_v21  ;;  %v1728_v11 = vrot.slane %v3076_v21, 4 }
 0x2fc   : > { %v1178_v27 = vsel %vm881_vm2, 0.0, %v1177_v33  ;;  %v1180_v28 = vsel %vm881_vm2, 0.0, %v1179_v18  ;;  %v1185_v62 = vperm.slane %v1181_v24, %v3749_v22  ;;  %v1733_v9 = vperm.slane %v1727_v26, %v3749_v22 }
 0x2fd   : > { %v1197_v19 = vrot.slane %v1180_v28, 4  ;;  %v1729_v29 = vsel %vm881_vm2, %v3081_v3, %v1728_v11  ;;  %v1715_v30 = vsel %vm881_vm2, %v1714_v20, %v3075_v23  ;;  %v1716_v31 = vrot.slane %v3075_v23, 4 }
 0x2fe   : > { %v1737_v34 = vperm.slane %v1729_v29, %v3749_v22  ;;  %v1738_v36 = vrot.slane %v1733_v9, 4  ;;  %v1721_v38 = vperm.slane %v1715_v30, %v3749_v22  ;;  %v1187_v39 = vsel %vm881_vm2, %v1186_v25, %v1174_v17 }
 0x2ff   : > { %v1717_v40 = vsel %vm881_vm2, %v3080_v0, %v1716_v31  ;;  %v1191_v42 = vperm.slane %v1187_v39, %v3749_v22  ;;  %v1192_v43 = vsel %vm881_vm2, %v1179_v18, %v1168_v6  ;;  %v1198_v44 = vsel %vm881_vm2, %v1197_v19, %v1178_v27 }
 0x300   : > { %v1750_v45 = vrot.slane %v1737_v34, 4  ;;  %v1725_v46 = vperm.slane %v1717_v40, %v3749_v22  ;;  %v1739_v47 = vsel %vm881_vm2, %v1738_v36, %v1721_v38  ;;  %v1740_v49 = vrot.slane %v1721_v38, 4 }
 0x301   : > { %v1745_v52 = vperm.slane %v1739_v47, %v3759_v37  ;;  %v1196_v55 = vperm.slane %v1192_v43, %v3749_v22  ;;  %v1202_v56 = vperm.slane %v1198_v44, %v3749_v22  ;;  %v1205_v58 = vrot.slane %v1185_v62, 4 }
 0x302   : > { %v1741_v59 = vsel %vm881_vm2, %v1733_v9, %v1740_v49  ;;  %v1751_v60 = vsel %vm881_vm2, %v1750_v45, %v1725_v46  ;;  %v1752_v61 = vrot.slane %v1725_v46, 4  ;;  %v1203_v63 = vrot.slane %v1191_v42, 4 }
 0x303   : > { %v1749_v1 = vperm.slane %v1741_v59, %v3759_v37  ;;  %v1757_v2 = vperm.slane %v1751_v60, %v3759_v37  ;;  %v1762_v3 = vrot.slane %v1745_v52, 4  ;;  %v1206_v0 = vsel %vm881_vm2, %v1191_v42, %v1205_v58 }
 0x304   : > { %v1753_v4 = vsel %vm881_vm2, %v1737_v34, %v1752_v61  ;;  %v1214_v5 = vperm.slane %v1206_v0, %v3759_v37  ;;  %v1217_v7 = vrot.slane %v1196_v55, 4  ;;  %v1204_v6 = vsel %vm881_vm2, %v1203_v63, %v1185_v62 }
 0x305   : > { %v1761_v8 = vperm.slane %v1753_v4, %v3759_v37  ;;  %v1763_v10 = vsel %vm881_vm2, 0.0, %v1762_v3  ;;  %v1764_v48 = vrot.slane %v1749_v1, 4  ;;  %v1766_v12 = vrot.slane %v1757_v2, 4 }
 0x306   : > { %v1218_v16 = vsel %vm881_vm2, %v1202_v56, %v1217_v7  ;;  %v1233_v20 = vrot.slane %v1214_v5, 4  ;;  %v1210_v21 = vperm.slane %v1204_v6, %v3759_v37  ;;  %v1215_v23 = vrot.slane %v1202_v56, 4 }
 0x307   : > { %v1765_v17 = vsel %vm881_vm2, 0.0, %v1764_v48  ;;  %v1767_v15 = vsel %vm881_vm2, 0.0, %v1766_v12  ;;  %v1768_v33 = vrot.slane %v1761_v8, 4  ;;  %v1770_v18 = vsel %vm881_vm2, %v1764_v48, %v1745_v52  ;;  %3083 = vrot.lane.b32.xlu0 %v3924_v13, %s3449_s21 }
 0x308   : > { %v1774_v24 = vperm.slane %v1770_v18, %v3749_v22  ;;  %v1775_v25 = vrot.slane %v1765_v17, 4  ;;  %v1226_v26 = vperm.slane %v1218_v16, %v3759_v37  ;;  %v1216_v11 = vsel %vm881_vm2, %v1215_v23, %v1196_v55 }
 0x309   : > { %v1769_v27 = vsel %vm881_vm2, 0.0, %v1768_v33  ;;  %v1222_v28 = vperm.slane %v1216_v11, %v3759_v37  ;;  %v1229_v62 = vrot.slane %v1210_v21, 4  ;;  %v1781_v9 = vsel %vm881_vm2, %v1768_v33, %v1757_v2 }
 0x30a   : > { %v1786_v19 = vrot.slane %v1769_v27, 4  ;;  %v1234_v29 = vsel %vm881_vm2, %v1226_v26, %v1233_v20  ;;  %v1231_v30 = vrot.slane %v1226_v26, 4  ;;  %v1776_v13 = vsel %vm881_vm2, %v1775_v25, %v1763_v10 }
 0x30b   : > { %v1377_v31 = vpack.c.bf16 %v1234_v29, %v1234_v29  ;;  %v1230_v34 = vsel %vm881_vm2, %v1222_v28, %v1229_v62  ;;  %v1227_v36 = vrot.slane %v1222_v28, 4  ;;  %v1780_v38 = vperm.slane %v1776_v13, %v3749_v22 }
 0x30c   : > { %v1375_v39 = vpack.c.bf16 %v1230_v34, %v1230_v34  ;;  %v1232_v40 = vsel %vm881_vm2, %v1231_v30, %v1214_v5  ;;  %v1785_v42 = vperm.slane %v1781_v9, %v3749_v22  ;;  %v1787_v43 = vsel %vm881_vm2, %v1786_v19, %v1767_v15 }
 0x30d   : > { %v1440_v44 = vsel %vm1381_vm4, %v1377_v31, 0  ;;  %v1376_v45 = vpack.c.bf16 %v1232_v40, %v1232_v40  ;;  %v1228_v46 = vsel %vm881_vm2, %v1227_v36, %v1210_v21  ;;  %v1791_v47 = vperm.slane %v1787_v43, %v3749_v22 }
 0x30e   : > { %1449 = vmatpush.bf16.msra.mxu0 %v1440_v44  ;;  %v1402_v49 = vsel %vm1381_vm4, %v1375_v39, 0  ;;  %v1374_v52 = vpack.c.bf16 %v1228_v46, %v1228_v46  ;;  %v1794_v55 = vrot.slane %v1774_v24, 4  ;;  %v1806_v56 = vrot.slane %v1785_v42, 4  ;;  %v1955_v44 = vld [vmem:[#allocation6 + $0x1] sm:$0x1] }
 0x30f   : > { %1411 = vmatpush.bf16.msrb.mxu2 %v1402_v49  ;;  %v1421_v58 = vsel %vm1381_vm4, %v1376_v45, 0  ;;  %v1792_v59 = vrot.slane %v1780_v38, 4  ;;  %v1804_v60 = vrot.slane %v1791_v47, 4 }
 0x310   : > { %1430 = vmatpush.bf16.msrb.mxu3 %v1421_v58  ;;  %v1383_v61 = vsel %vm1381_vm4, %v1374_v52, 0  ;;  %v1795_v63 = vsel %vm881_vm2, %v1780_v38, %v1794_v55  ;;  %v1807_v1 = vsel %vm881_vm2, %v1791_v47, %v1806_v56 }
 0x311   : > { %1392 = vmatpush.bf16.msrb.mxu1 %v1383_v61  ;;  %v1803_v2 = vperm.slane %v1795_v63, %v3759_v37  ;;  %v1815_v3 = vperm.slane %v1807_v1, %v3759_v37  ;;  %v1793_v0 = vsel %vm881_vm2, %v1792_v59, %v1774_v24  ;;  %v1805_v4 = vsel %vm881_vm2, %v1804_v60, %v1785_v42 }
 0x312   : > { %v1799_v5 = vperm.slane %v1793_v0, %v3759_v37  ;;  %v1811_v7 = vperm.slane %v1805_v4, %v3759_v37  ;;  %v1947_v42 = vpack.c.bf16 %v3916_v54, %v3916_v54 }
 0x313   : > { %v1822_v6 = vrot.slane %v1803_v2, 4  ;;  %v1820_v8 = vrot.slane %v1815_v3, 4 }
 0x314   : > { %v1818_v10 = vrot.slane %v1799_v5, 4  ;;  %v1816_v48 = vrot.slane %v1811_v7, 4 }
 0x315   : > { %v1823_v12 = vsel %vm881_vm2, %v1815_v3, %v1822_v6  ;;  %v1821_v16 = vsel %vm881_vm2, %v1820_v8, %v1803_v2 }
 0x316   : > { %v1953_v20 = vpack.c.bf16 %v1823_v12, %v1823_v12  ;;  %v1819_v21 = vsel %vm881_vm2, %v1811_v7, %v1818_v10  ;;  %v1952_v23 = vpack.c.bf16 %v1821_v16, %v1821_v16  ;;  %v1817_v17 = vsel %vm881_vm2, %v1816_v48, %v1799_v5 }
 0x317   : > { %v1951_v15 = vpack.c.bf16 %v1819_v21, %v1819_v21  ;;  %v1950_v33 = vpack.c.bf16 %v1817_v17, %v1817_v17 }
 0x318   : > { %v2022_v18 = vsel %vm1249_vm3, %v1953_v20, 0  ;;  %v2003_v24 = vsel %vm1249_vm3, %v1952_v23, 0 }
 0x319   : > { %2031 = vmatpush.bf16.xpose.msrb.mxu0 %v2022_v18  ;;  %v1984_v25 = vsel %vm1249_vm3, %v1951_v15, 0  ;;  %2012 = vmatpush.bf16.xpose.msra.mxu3 %v2003_v24  ;;  %v1965_v26 = vsel %vm1249_vm3, %v1950_v33, 0 }
 0x31a   : > { %1993 = vmatpush.bf16.xpose.msra.mxu2 %v1984_v25  ;;  %1974 = vmatpush.bf16.xpose.msra.mxu1 %v1965_v26 }
 0x361   : > { %v1352_v11 = vpop.xlane.xlu2 %1351 }
 0x362   : > { %3123 = vrcp.f32 %v1352_v11 }
 0x365   : > { %v1358_v27 = vpop.xlane.xlu1 %1357 }
 0x366   : > { %v1355_v28 = vpop.xlane.xlu0 %1354  ;;  %3125 = vrcp.f32 %v1358_v27 }
 0x367   : > { %3127 = vrcp.f32 %v1355_v28 }
 0x368   : > { %v3124_v62 = vpop.eup %3123 }
 0x369   : > { %v1366_v9 = vmul.f32 %v3124_v62, %v3936_v32 }
 0x36b   : > { %v1370_v19 = vpack.c.bf16 %v1366_v9, %v1366_v9 }
 0x36c   : > { %v3126_v29 = vpop.eup %3125 }
 0x36d   : > { %v3128_v30 = vpop.eup %3127  ;;  %v1368_v13 = vmul.f32 %v3126_v29, %v3940_v35  ;;  %2853 = vmatmul.msk.bf16.vlgmr.msrb.gmra.mxu1 %vm1249_vm3, %v1370_v19  ;;  %v1361_v31 = vpop.xlane.xlu1 %1360  ;;  %v1946_v35 = vpack.c.bf16 %v3910_v51, %v3910_v51  ;;  %v2857_v51 = vadd.f32 -1.0, %v1955_v44 }
 0x36e   : > { %v1367_v34 = vmul.f32 %v3128_v30, %v3944_v41  ;;  %3129 = vrcp.f32 %v1361_v31  ;;  %v1948_v41 = vpack.c.bf16 %v3907_v50, %v3907_v50 }
 0x36f   : > { %v1372_v36 = vpack.c.bf16 %v1368_v13, %v1368_v13  ;;  %v1957_v47 = vmul.f32 1e+30, %v2857_v51 }
 0x370   : > { %v1371_v38 = vpack.c.bf16 %v1367_v34, %v1367_v34 }
 0x371   : > { %2855 = vmatmul.msk.bf16.vlgmr.msrb.gmra.mxu3 %vm1249_vm3, %v1372_v36  ;;  %v4065_v60 = vperm.slane %v1957_v47, 0 }
 0x372   : > { %2854 = vmatmul.msk.bf16.vlgmr.msrb.gmra.mxu2 %vm1249_vm3, %v1371_v38 }
 0x374   : > { %v3130_v39 = vpop.eup %3129 }
 0x375   : > { %v1369_v32 = vmul.f32 %v3130_v39, %v3956_v57  ;;  %v1949_v57 = vpack.c.bf16 %v3913_v53, %v3913_v53 }
 0x377   : > { %v1373_v40 = vpack.c.bf16 %v1369_v32, %v1369_v32 }
 0x379   : > { %2856 = vmatmul.msk.bf16.vlgmr.msra.gmra.mxu0 %vm1249_vm3, %v1373_v40 }
 0x37d   : > { %2858 = vmatmul.msk.bf16.vlgmr.msra.gmra.mxu1 %vm1249_vm3, %v1946_v35 }
 0x381   : > { %2860 = vmatmul.msk.bf16.vlgmr.msra.gmra.mxu3 %vm1249_vm3, %v1948_v41 }
 0x382   : > { %2859 = vmatmul.msk.bf16.vlgmr.msra.gmra.mxu2 %vm1249_vm3, %v1947_v42 }
 0x389   : > { %2861 = vmatmul.msk.bf16.vlgmr.msrb.gmra.mxu0 %vm1249_vm3, %v1949_v57 }
 0x3ea   : > { %v1394_v43 = vpop.f32.mrf.mxu1 }
 0x3eb   : > { %v1457_v46 = vrot.slane %v1394_v43, 4 }
 0x3f2   : > { %v1396_v45 = vpop.f32.mrf.mxu1 }
 0x3f4   : > { %v1432_v49 = vpop.f32.mrf.mxu3 }
 0x3f5   : > { %v1413_v50 = vpop.f32.mrf.mxu2  ;;  %v1455_v52 = vrot.slane %v1432_v49, 4  ;;  %v1458_v54 = vsel %vm881_vm2, %v1432_v49, %v1457_v46 }
 0x3f6   : > { %v1469_v55 = vrot.slane %v1413_v50, 4  ;;  %v1466_v56 = vperm.slane %v1458_v54, %v3749_v22  ;;  %v1451_v58 = vpop.f32.mrf.mxu0 }
 0x3f7   : > { %v1456_v59 = vsel %vm881_vm2, %v1455_v52, %v1394_v43  ;;  %v1467_v53 = vrot.slane %v1451_v58, 4 }
 0x3f8   : > { %v1462_v61 = vperm.slane %v1456_v59, %v3749_v22  ;;  %v1493_v63 = vrot.slane %v1466_v56, 4  ;;  %v1470_v1 = vsel %vm881_vm2, %v1451_v58, %v1469_v55 }
 0x3f9   : > { %v1468_v2 = vsel %vm881_vm2, %v1467_v53, %v1413_v50  ;;  %v1478_v3 = vperm.slane %v1470_v1, %v3749_v22 }
 0x3fa   : > { %v1481_v0 = vrot.slane %v1462_v61, 4  ;;  %v1474_v4 = vperm.slane %v1468_v2, %v3749_v22  ;;  %v1976_v5 = vpop.f32.mrf.mxu1 }
 0x3fb   : > { %v1491_v7 = vrot.slane %v1478_v3, 4  ;;  %v1494_v6 = vsel %vm881_vm2, %v1478_v3, %v1493_v63  ;;  %v4074_v8 = vadd.f32 %v1976_v5, %v4065_v60 }
 0x3fc   : > { %v1479_v10 = vrot.slane %v1474_v4, 4  ;;  %v1482_v48 = vsel %vm881_vm2, %v1474_v4, %v1481_v0  ;;  %v1502_v12 = vperm.slane %v1494_v6, %v3759_v37  ;;  %v1434_v16 = vpop.f32.mrf.mxu3 }
 0x3fd   : > { %v1490_v20 = vperm.slane %v1482_v48, %v3759_v37  ;;  %v1492_v21 = vsel %vm881_vm2, %v1491_v7, %v1466_v56  ;;  %v1415_v23 = vpop.f32.mrf.mxu2  ;;  %v2037_v17 = vsel %vm1249_vm3, %v4074_v8, -inf }
 0x3fe   : > { %v1480_v15 = vsel %vm881_vm2, %v1479_v10, %v1462_v61  ;;  %v1498_v33 = vperm.slane %v1492_v21, %v3759_v37  ;;  %v1509_v18 = vrot.slane %v1502_v12, 4  ;;  %2038 = vmax.xlane.f32.xlu1 %v2037_v17  ;;  %v1453_v24 = vpop.f32.mrf.mxu0 }
 0x3ff   : > { %v1486_v25 = vperm.slane %v1480_v15, %v3759_v37  ;;  %v1505_v26 = vrot.slane %v1490_v20, 4 }
 0x400   : > { %v1507_v11 = vrot.slane %v1498_v33, 4  ;;  %v1510_v27 = vsel %vm881_vm2, 0.0, %v1509_v18  ;;  %v1522_v28 = vsel %vm881_vm2, %v1509_v18, %v1498_v33 }
 0x401   : > { %v1503_v62 = vrot.slane %v1486_v25, 4  ;;  %v1506_v9 = vsel %vm881_vm2, 0.0, %v1505_v26  ;;  %v1511_v19 = vsel %vm881_vm2, %v1505_v26, %v1486_v25  ;;  %v1526_v29 = vperm.slane %v1522_v28, %v3749_v22 }
 0x402   : > { %v1508_v30 = vsel %vm881_vm2, 0.0, %v1507_v11  ;;  %v1516_v13 = vrot.slane %v1506_v9, 4  ;;  %v1527_v31 = vrot.slane %v1510_v27, 4  ;;  %v1978_v34 = vpop.f32.mrf.mxu1  ;;  %v1515_v36 = vperm.slane %v1511_v19, %v3749_v22 }
 0x403   : > { %v1547_v38 = vrot.slane %v1526_v29, 4  ;;  %v1504_v39 = vsel %vm881_vm2, 0.0, %v1503_v62 }
 0x404   : > { %v1528_v32 = vsel %vm881_vm2, %v1527_v31, %v1508_v30  ;;  %v2014_v40 = vpop.f32.mrf.mxu3  ;;  %v1517_v35 = vsel %vm881_vm2, %v1516_v13, %v1504_v39  ;;  %v1535_v41 = vrot.slane %v1515_v36, 4  ;;  %v3084_v30 = vpop.permute.xlu0 %3083 }
 0x405   : > { %v1532_v42 = vperm.slane %v1528_v32, %v3749_v22  ;;  %v1995_v57 = vpop.f32.mrf.mxu2  ;;  %v1521_v43 = vperm.slane %v1517_v35, %v3749_v22  ;;  %v2015_v3 = vadd.f32 %v2014_v40, %v4065_v60  ;;  %v3086_v13 = vunpack.i.h.bf16 %v3084_v30 }
 0x406   : > { %v2033_v44 = vpop.f32.mrf.mxu0  ;;  %v1996_v12 = vadd.f32 %v1995_v57, %v4065_v60  ;;  %v3085_v31 = vunpack.i.l.bf16 %v3084_v30 }
 0x407   : > { %v2034_v51 = vadd.f32 %v2033_v44, %v4065_v60  ;;  %v1536_v45 = vsel %vm881_vm2, %v1521_v43, %v1535_v41  ;;  %v1548_v46 = vsel %vm881_vm2, %v1532_v42, %v1547_v38  ;;  %v1533_v50 = vrot.slane %v1521_v43, 4 }
 0x408   : > { %v1544_v47 = vperm.slane %v1536_v45, %v3759_v37  ;;  %v1556_v49 = vperm.slane %v1548_v46, %v3759_v37  ;;  %v1545_v54 = vrot.slane %v1532_v42, 4  ;;  %v2043_v48 = vsel %vm1249_vm3, %v2015_v3, -inf }
 0x409   : > { %v2046_v52 = vsel %vm1249_vm3, %v2034_v51, -inf  ;;  %v1534_v56 = vsel %vm881_vm2, %v1533_v50, %v1515_v36  ;;  %v2040_v16 = vsel %vm1249_vm3, %v1996_v12, -inf  ;;  %v1850_v36 = vrot.slane %v3086_v13, 4 }
 0x40a   : > { %2047 = vmax.xlane.f32.xlu1 %v2046_v52  ;;  %v1561_v55 = vrot.slane %v1556_v49, 4  ;;  %v1563_v58 = vrot.slane %v1544_v47, 4  ;;  %v1540_v59 = vperm.slane %v1534_v56, %v3759_v37  ;;  %v1546_v53 = vsel %vm881_vm2, %v1545_v54, %v1526_v29 }
 0x40b   : > { %v1552_v1 = vperm.slane %v1546_v53, %v3759_v37  ;;  %v1838_v38 = vrot.slane %v3085_v31, 4 }
 0x40c   : > { %v2016_v61 = vpop.f32.mrf.mxu3  ;;  %v4107_v63 = vsel %vm881_vm2, %v1561_v55, %v1544_v47  ;;  %v4111_v2 = vsel %vm881_vm2, %v1556_v49, %v1563_v58  ;;  %v1559_v4 = vrot.slane %v1540_v59, 4 }
 0x40d   : > { %v1997_v0 = vpop.f32.mrf.mxu2  ;;  %v1557_v7 = vrot.slane %v1552_v1, 4 }
 0x40e   : > { %v2035_v5 = vpop.f32.mrf.mxu0  ;;  %v4115_v6 = vsel %vm881_vm2, %v1552_v1, %v1559_v4 }
 0x40f   : > { %v4118_v10 = vsel %vm881_vm2, %v1557_v7, %v1540_v59 }
 0x412   : > { %2044 = vmax.xlane.f32.xlu1 %v2043_v48 }
 0x41a   : > { %2041 = vmax.xlane.f32.xlu1 %v2040_v16 }
 0x433   : > { %3088 = vrot.lane.b32.xlu1 %v3932_v14, %s3449_s21 }
 0x471   : > { %v2039_v20 = vpop.xlane.xlu1 %2038 }
 0x472   : > { %v2049_v14 = vsub.f32 %v4074_v8, %v2039_v20 }
 0x474   : > { %v2053_v62 = vmul.f32 1.442695, %v2049_v14 }
 0x47d   : > { %v2048_v21 = vpop.xlane.xlu1 %2047 }
 0x47e   : > { %v2052_v23 = vsub.f32 %v2034_v51, %v2048_v21 }
 0x480   : > { %v2059_v17 = vmul.f32 1.442695, %v2052_v23 }
 0x482   : > { %3131 = vpow2.f32 %v2059_v17 }
 0x485   : > { %v2045_v15 = vpop.xlane.xlu1 %2044 }
 0x486   : > { %v2051_v33 = vsub.f32 %v2015_v3, %v2045_v15 }
 0x488   : > { %v4125_v18 = vpop.eup %3131  ;;  %v2057_v24 = vmul.f32 1.442695, %v2051_v33 }
 0x489   : > { %v2070_v25 = vsel %vm1249_vm3, %v4125_v18, 0.0 }
 0x48a   : > { %3133 = vpow2.f32 %v2057_v24  ;;  %2071 = vadd.xlane.f32.xlu0 %v2070_v25 }
 0x48d   : > { %v2042_v60 = vpop.xlane.xlu1 %2041 }
 0x48e   : > { %v2050_v26 = vsub.f32 %v1996_v12, %v2042_v60 }
 0x490   : > { %v4129_v11 = vpop.eup %3133  ;;  %v2055_v27 = vmul.f32 1.442695, %v2050_v26 }
 0x491   : > { %v2067_v28 = vsel %vm1249_vm3, %v4129_v11, 0.0 }
 0x492   : > { %3135 = vpow2.f32 %v2055_v27  ;;  %2068 = vadd.xlane.f32.xlu2 %v2067_v28 }
 0x493   : > { %3137 = vpow2.f32 %v2053_v62 }
 0x498   : > { %v4134_v9 = vpop.eup %3135 }
 0x499   : > { %v2064_v19 = vsel %vm1249_vm3, %v4134_v9, 0.0  ;;  %v4138_v29 = vpop.eup %3137 }
 0x49a   : > { %2065 = vadd.xlane.f32.xlu2 %v2064_v19  ;;  %v2061_v8 = vsel %vm1249_vm3, %v4138_v29, 0.0 }
 0x4a2   : > { %2062 = vadd.xlane.f32.xlu2 %v2061_v8 }
 0x4a5   : > { %v3089_v34 = vpop.permute.xlu1 %3088 }
 0x4a6   : > { %v3091_v39 = vunpack.i.h.bf16 %v3089_v34  ;;  %v3090_v32 = vunpack.i.l.bf16 %v3089_v34 }
 0x4a8   : > { %v1848_v40 = vrot.slane %v3091_v39, 4  ;;  %v1851_v35 = vsel %vm881_vm2, %v3091_v39, %v1850_v36  ;;  %v1836_v41 = vrot.slane %v3090_v32, 4  ;;  %v1839_v42 = vsel %vm881_vm2, %v3090_v32, %v1838_v38 }
 0x4a9   : > { %v1859_v57 = vperm.slane %v1851_v35, %v3749_v22  ;;  %v1847_v43 = vperm.slane %v1839_v42, %v3749_v22 }
 0x4aa   : > { %v1849_v44 = vsel %vm881_vm2, %v1848_v40, %v3086_v13  ;;  %v1837_v51 = vsel %vm881_vm2, %v1836_v41, %v3085_v31 }
 0x4ab   : > { %v1855_v45 = vperm.slane %v1849_v44, %v3749_v22  ;;  %v1872_v46 = vrot.slane %v1859_v57, 4  ;;  %v1843_v47 = vperm.slane %v1837_v51, %v3749_v22  ;;  %v1874_v49 = vrot.slane %v1847_v43, 4 }
 0x4ad   : > { %v1860_v50 = vrot.slane %v1855_v45, 4  ;;  %v1862_v52 = vrot.slane %v1843_v47, 4  ;;  %v1873_v54 = vsel %vm881_vm2, %v1872_v46, %v1847_v43  ;;  %v1875_v55 = vsel %vm881_vm2, %v1859_v57, %v1874_v49 }
 0x4ae   : > { %v1879_v56 = vperm.slane %v1873_v54, %v3759_v37  ;;  %v1883_v58 = vperm.slane %v1875_v55, %v3759_v37 }
 0x4af   : > { %v1861_v59 = vsel %vm881_vm2, %v1860_v50, %v1843_v47  ;;  %v1863_v53 = vsel %vm881_vm2, %v1855_v45, %v1862_v52 }
 0x4b0   : > { %v1867_v61 = vperm.slane %v1861_v59, %v3759_v37  ;;  %v1871_v1 = vperm.slane %v1863_v53, %v3759_v37  ;;  %v1888_v3 = vrot.slane %v1879_v56, 4  ;;  %v1890_v0 = vrot.slane %v1883_v58, 4 }
 0x4b2   : > { %v1884_v4 = vrot.slane %v1867_v61, 4  ;;  %v1886_v5 = vrot.slane %v1871_v1, 4  ;;  %v1891_v7 = vsel %vm881_vm2, 0.0, %v1890_v0  ;;  %v1903_v48 = vsel %vm881_vm2, %v1890_v0, %v1879_v56 }
 0x4b3   : > { %v1908_v12 = vrot.slane %v1891_v7, 4  ;;  %v1889_v20 = vsel %vm881_vm2, 0.0, %v1888_v3  ;;  %v1907_v21 = vperm.slane %v1903_v48, %v3749_v22 }
 0x4b4   : > { %v1887_v16 = vsel %vm881_vm2, 0.0, %v1886_v5  ;;  %v1892_v23 = vsel %vm881_vm2, %v1886_v5, %v1867_v61  ;;  %v1885_v24 = vsel %vm881_vm2, 0.0, %v1884_v4 }
 0x4b5   : > { %v1897_v17 = vrot.slane %v1887_v16, 4  ;;  %v1896_v15 = vperm.slane %v1892_v23, %v3749_v22  ;;  %v1909_v33 = vsel %vm881_vm2, %v1908_v12, %v1889_v20  ;;  %v1928_v60 = vrot.slane %v1907_v21, 4 }
 0x4b6   : > { %v1913_v25 = vperm.slane %v1909_v33, %v3749_v22 }
 0x4b7   : > { %v1898_v26 = vsel %vm881_vm2, %v1897_v17, %v1885_v24  ;;  %v1916_v14 = vrot.slane %v1896_v15, 4 }
 0x4b8   : > { %v1902_v27 = vperm.slane %v1898_v26, %v3749_v22  ;;  %v1929_v28 = vsel %vm881_vm2, %v1913_v25, %v1928_v60  ;;  %v1926_v62 = vrot.slane %v1913_v25, 4 }
 0x4b9   : > { %v1937_v19 = vperm.slane %v1929_v28, %v3759_v37 }
 0x4ba   : > { %v1917_v30 = vsel %vm881_vm2, %v1902_v27, %v1916_v14  ;;  %v1914_v8 = vrot.slane %v1902_v27, 4  ;;  %v1927_v13 = vsel %vm881_vm2, %v1926_v62, %v1907_v21 }
 0x4bb   : > { %v1925_v31 = vperm.slane %v1917_v30, %v3759_v37  ;;  %v1942_v34 = vrot.slane %v1937_v19, 4  ;;  %v1933_v36 = vperm.slane %v1927_v13, %v3759_v37 }
 0x4bc   : > { %v1915_v38 = vsel %vm881_vm2, %v1914_v8, %v1896_v15 }
 0x4bd   : > { %v1943_v39 = vsel %vm881_vm2, %v1942_v34, %v1925_v31  ;;  %v1921_v32 = vperm.slane %v1915_v38, %v3759_v37  ;;  %v1938_v40 = vrot.slane %v1933_v36, 4  ;;  %v1944_v35 = vrot.slane %v1925_v31, 4 }
 0x4be   : > { %v2087_v41 = vpack.c.bf16 %v1943_v39, %v1943_v39 }
 0x4bf   : > { %v1939_v42 = vsel %vm881_vm2, %v1938_v40, %v1921_v32  ;;  %v1945_v57 = vsel %vm881_vm2, %v1937_v19, %v1944_v35  ;;  %v1940_v43 = vrot.slane %v1921_v32, 4 }
 0x4c0   : > { %v2131_v44 = vsel %vm1381_vm4, %v2087_v41, 0  ;;  %v2085_v51 = vpack.c.bf16 %v1939_v42, %v1939_v42  ;;  %v2088_v45 = vpack.c.bf16 %v1945_v57, %v1945_v57 }
 0x4c1   : > { %2140 = vmatpush.bf16.msrb.mxu3 %v2131_v44  ;;  %v1941_v46 = vsel %vm881_vm2, %v1933_v36, %v1940_v43 }
 0x4c2   : > { %v2093_v47 = vsel %vm1381_vm4, %v2085_v51, 0  ;;  %v2150_v49 = vsel %vm1381_vm4, %v2088_v45, 0  ;;  %v2086_v50 = vpack.c.bf16 %v1941_v46, %v1941_v46 }
 0x4c3   : > { %2102 = vmatpush.bf16.msrb.mxu1 %v2093_v47  ;;  %2159 = vmatpush.bf16.msra.mxu0 %v2150_v49 }
 0x4c4   : > { %v2112_v52 = vsel %vm1381_vm4, %v2086_v50, 0 }
 0x4c5   : > { %2121 = vmatpush.bf16.msrb.mxu2 %v2112_v52 }
 0x4fd   : > { %v2072_v54 = vpop.xlane.xlu0 %2071 }
 0x4fe   : > { %3139 = vrcp.f32 %v2072_v54 }
 0x504   : > { %v3140_v55 = vpop.eup %3139 }
 0x505   : > { %v2080_v56 = vmul.f32 %v3140_v55, %v4125_v18  ;;  %v2069_v58 = vpop.xlane.xlu2 %2068 }
 0x506   : > { %3141 = vrcp.f32 %v2069_v58 }
 0x507   : > { %v2084_v59 = vpack.c.bf16 %v2080_v56, %v2080_v56 }
 0x509   : > { %2865 = vmatmul.msk.bf16.vlgmr.msra.gmra.mxu0 %vm1249_vm3, %v2084_v59 }
 0x50c   : > { %v3142_v53 = vpop.eup %3141 }
 0x50d   : > { %v2079_v61 = vmul.f32 %v3142_v53, %v4129_v11  ;;  %v2066_v1 = vpop.xlane.xlu2 %2065 }
 0x50e   : > { %3143 = vrcp.f32 %v2066_v1 }
 0x50f   : > { %v2083_v3 = vpack.c.bf16 %v2079_v61, %v2079_v61 }
 0x511   : > { %2864 = vmatmul.msk.bf16.vlgmr.msrb.gmra.mxu3 %vm1249_vm3, %v2083_v3 }
 0x514   : > { %v3144_v0 = vpop.eup %3143 }
 0x515   : > { %v2078_v4 = vmul.f32 %v3144_v0, %v4134_v9  ;;  %v2063_v5 = vpop.xlane.xlu2 %2062 }
 0x516   : > { %3145 = vrcp.f32 %v2063_v5 }
 0x517   : > { %v2082_v7 = vpack.c.bf16 %v2078_v4, %v2078_v4 }
 0x519   : > { %2863 = vmatmul.msk.bf16.vlgmr.msrb.gmra.mxu2 %vm1249_vm3, %v2082_v7 }
 0x51c   : > { %v3146_v18 = vpop.eup %3145 }
 0x51d   : > { %v2077_v48 = vmul.f32 %v3146_v18, %v4138_v29 }
 0x51f   : > { %v2081_v12 = vpack.c.bf16 %v2077_v48, %v2077_v48 }
 0x521   : > { %2862 = vmatmul.msk.bf16.vlgmr.msrb.gmra.mxu1 %vm1249_vm3, %v2081_v12 }
 0x586   : > { %v2161_v11 = vpop.f32.mrf.mxu0 }
 0x587   : > { %v2177_v21 = vrot.slane %v2161_v11, 4 }
 0x58e   : > { %v2163_v16 = vpop.f32.mrf.mxu0 }
 0x594   : > { %v2142_v20 = vpop.f32.mrf.mxu3 }
 0x595   : > { %v2165_v15 = vrot.slane %v2142_v20, 4 }
 0x59c   : > { %v2123_v23 = vpop.f32.mrf.mxu2  ;;  %v2144_v17 = vpop.f32.mrf.mxu3 }
 0x59d   : > { %v2178_v9 = vsel %vm881_vm2, %v2177_v21, %v2123_v23  ;;  %v2179_v33 = vrot.slane %v2123_v23, 4 }
 0x59e   : > { %v2184_v24 = vperm.slane %v2178_v9, %v3749_v22  ;;  %v2104_v25 = vpop.f32.mrf.mxu1 }
 0x59f   : > { %v2180_v60 = vsel %vm881_vm2, %v2161_v11, %v2179_v33  ;;  %v2166_v29 = vsel %vm881_vm2, %v2165_v15, %v2104_v25  ;;  %v2167_v26 = vrot.slane %v2104_v25, 4 }
 0x5a0   : > { %v2188_v14 = vperm.slane %v2180_v60, %v3749_v22  ;;  %v2189_v27 = vrot.slane %v2184_v24, 4  ;;  %v2172_v28 = vperm.slane %v2166_v29, %v3749_v22 }
 0x5a1   : > { %v2168_v62 = vsel %vm881_vm2, %v2142_v20, %v2167_v26  ;;  %v2922_v26 = vld [vmem:[%s3704_s19 + $0x8] sm:$0xff] }
 0x5a2   : > { %v2201_v19 = vrot.slane %v2188_v14, 4  ;;  %v2176_v30 = vperm.slane %v2168_v62, %v3749_v22  ;;  %v2190_v8 = vsel %vm881_vm2, %v2189_v27, %v2172_v28  ;;  %v2191_v13 = vrot.slane %v2172_v28, 4  ;;  %2320 = vmatpush.bf16.msra.mxu1 %v2922_v26 }
 0x5a3   : > { %v2196_v31 = vperm.slane %v2190_v8, %v3759_v37 }
 0x5a4   : > { %v2192_v34 = vsel %vm881_vm2, %v2184_v24, %v2191_v13  ;;  %v2202_v36 = vsel %vm881_vm2, %v2201_v19, %v2176_v30  ;;  %v2203_v38 = vrot.slane %v2176_v30, 4  ;;  %v2125_v39 = vpop.f32.mrf.mxu2 }
 0x5a5   : > { %v2200_v32 = vperm.slane %v2192_v34, %v3759_v37  ;;  %v2208_v40 = vperm.slane %v2202_v36, %v3759_v37  ;;  %v2213_v57 = vrot.slane %v2196_v31, 4 }
 0x5a6   : > { %v2204_v35 = vsel %vm881_vm2, %v2188_v14, %v2203_v38  ;;  %v2106_v41 = vpop.f32.mrf.mxu1  ;;  %v2921_v14 = vld [vmem:[%s3704_s19] sm:$0xff] }
 0x5a7   : > { %v2212_v42 = vperm.slane %v2204_v35, %v3759_v37  ;;  %v2215_v43 = vrot.slane %v2200_v32, 4  ;;  %v2217_v51 = vrot.slane %v2208_v40, 4  ;;  %v2214_v50 = vsel %vm881_vm2, 0.0, %v2213_v57  ;;  %2321 = vmatpush.bf16.msra.mxu1 %v2921_v14 }
 0x5a9   : > { %v2216_v44 = vsel %vm881_vm2, 0.0, %v2215_v43  ;;  %v2219_v45 = vrot.slane %v2212_v42, 4  ;;  %v2221_v46 = vsel %vm881_vm2, %v2215_v43, %v2196_v31  ;;  %v2218_v59 = vsel %vm881_vm2, 0.0, %v2217_v51  ;;  %v3157_v42 = vld [vmem:[#allocation2] sm:$0xff]  ;;  %v3158_v51 = vld [vmem:[#allocation2 + $0x8] sm:$0xff] }
 0x5aa   : > { %v2225_v47 = vperm.slane %v2221_v46, %v3749_v22  ;;  %v2226_v49 = vrot.slane %v2216_v44, 4 }
 0x5ab   : > { %v2220_v52 = vsel %vm881_vm2, 0.0, %v2219_v45  ;;  %v2232_v54 = vsel %vm881_vm2, %v2219_v45, %v2208_v40  ;;  %v3108_v40 = vld [vmem:[%s4386_s23] ss:$0 sm:$0xff] }
 0x5ac   : > { %v2227_v55 = vsel %vm881_vm2, %v2226_v49, %v2214_v50  ;;  %v2236_v56 = vperm.slane %v2232_v54, %v3749_v22  ;;  %v2237_v58 = vrot.slane %v2220_v52, 4  ;;  %v2245_v61 = vrot.slane %v2225_v47, 4 }
 0x5ad   : > { %v2231_v53 = vperm.slane %v2227_v55, %v3749_v22 }
 0x5ae   : > { %v2238_v1 = vsel %vm881_vm2, %v2237_v58, %v2218_v59  ;;  %v2257_v3 = vrot.slane %v2236_v56, 4 }
 0x5af   : > { %v2242_v0 = vperm.slane %v2238_v1, %v3749_v22  ;;  %v2243_v4 = vrot.slane %v2231_v53, 4  ;;  %v2246_v5 = vsel %vm881_vm2, %v2231_v53, %v2245_v61 }
 0x5b0   : > { %v2254_v20 = vperm.slane %v2246_v5, %v3759_v37 }
 0x5b1   : > { %v2258_v7 = vsel %vm881_vm2, %v2242_v0, %v2257_v3  ;;  %v2244_v18 = vsel %vm881_vm2, %v2243_v4, %v2225_v47  ;;  %v2255_v48 = vrot.slane %v2242_v0, 4  ;;  %v3455_v47 = vmov 32.0  }
 0x5b2   : > { %v2266_v12 = vperm.slane %v2258_v7, %v3759_v37  ;;  %v2250_v11 = vperm.slane %v2244_v18, %v3759_v37  ;;  %v2273_v25 = vrot.slane %v2254_v20, 4  ;;  %3147 = vrcp.f32 %v3455_v47 }
 0x5b3   : > { %v2256_v16 = vsel %vm881_vm2, %v2255_v48, %v2236_v56 }
 0x5b4   : > { %v2271_v21 = vrot.slane %v2266_v12, 4  ;;  %v2262_v23 = vperm.slane %v2256_v16, %v3759_v37  ;;  %v2269_v22 = vrot.slane %v2250_v11, 4  ;;  %v2274_v37 = vsel %vm881_vm2, %v2266_v12, %v2273_v25  ;;  %v2923_v16 = vld [vmem:[%s3713_s30] sm:$0xff] }
 0x5b5   : > { %v3102_v29 = vpack.i.bf16 %v2274_v37, %v4111_v2 }
 0x5b6   : > { %v2272_v17 = vsel %vm881_vm2, %v2271_v21, %v2254_v20  ;;  %v2267_v15 = vrot.slane %v2262_v23, 4  ;;  %v2270_v9 = vsel %vm881_vm2, %v2262_v23, %v2269_v22 }
 0x5b7   : > { %v3097_v33 = vpack.i.bf16 %v2272_v17, %v4107_v63  ;;  %v3092_v24 = vpack.i.bf16 %v2270_v9, %v4115_v6 }
 0x5b8   : > { %v2268_v60 = vsel %vm881_vm2, %v2267_v15, %v2250_v11  ;;  %v3148_v49 = vpop.eup %3147  ;;  %v2924_v11 = vld [vmem:[%s3713_s30 + $0x8] sm:$0xff] }
 0x5b9   : > { %3098 = vrot.lane.b32.xlu1 %v3097_v33, %s3452_s28  ;;  %3093 = vrot.lane.b32.xlu2 %v3092_v24, %s3453_s17  ;;  %v2339_v50 = vmul.f32 32.0, %v3148_v49  ;;  %vm2343_vm7 = vweird.f32 %v3148_v49 }
 0x5ba   : > { %2423 = vmatpush.bf16.msra.mxu2 %v2924_v11 }
 0x5bb   : > { %v2340_v52 = vsub.f32 1.0, %v2339_v50 }
 0x5bd   : > { %v2341_v54 = vmul.f32 %v3148_v49, %v2340_v52 }
 0x5be   : > { %2424 = vmatpush.bf16.msra.mxu2 %v2923_v16 }
 0x5bf   : > { %v2342_v55 = vadd.f32 %v3148_v49, %v2341_v54 }
 0x5c1   : > { %3103 = vrot.lane.b32.xlu1 %v3102_v29, %s3454_s26  ;;  %v4251_v56 = vsel %vm2343_vm7, %v3148_v49, %v2342_v55 }
 0x613   : > { %v3094_v6 = vpop.permute.xlu2 %3093 }
 0x614   : > { %v3096_v27 = vunpack.i.h.bf16 %v3094_v6  ;;  %v3095_v28 = vunpack.i.l.bf16 %v3094_v6 }
 0x616   : > { %v1577_v8 = vsel %vm1249_vm3, %v4118_v10, %v3095_v28  ;;  %v2287_v2 = vsel %vm1249_vm3, %v2268_v60, %v3096_v27 }
 0x62b   : > { %v3099_v63 = vpop.permute.xlu1 %3098 }
 0x62c   : > { %v3101_v62 = vunpack.i.h.bf16 %v3099_v63  ;;  %v3100_v19 = vunpack.i.l.bf16 %v3099_v63  ;;  %v3109_v63 = vld [vmem:[%s4387_s12] ss:$0 sm:$0xff] }
 0x62e   : > { %v1579_v34 = vsel %vm1578_vm5, %v1577_v8, %v3100_v19  ;;  %v2288_v36 = vsel %vm1578_vm5, %v2287_v2, %v3101_v62  ;;  %v3110_v62 = vld [vmem:[%s4388_s10] ss:$0 sm:$0xff] }
 0x633   : > { %v3104_v30 = vpop.permute.xlu1 %3103 }
 0x634   : > { %v3106_v13 = vunpack.i.h.bf16 %v3104_v30  ;;  %v3105_v31 = vunpack.i.l.bf16 %v3104_v30 }
 0x636   : > { %v1581_v38 = vsel %vm1580_vm6, %v1579_v34, %v3105_v31  ;;  %v2289_v39 = vsel %vm1580_vm6, %v2288_v36, %v3106_v13  ;;  %v2928_v34 = vld [vmem:[%s3723_s20 + $0x18] sm:$0xff]  ;;  %v2927_v36 = vld [vmem:[%s3723_s20 + $0x10] sm:$0xff] }
 0x637   : > { %v2290_v32 = vpack.c.bf16 %v2289_v39, %v1581_v38  ;;  %2478 = vmatpush.bf16.msra.mxu3 %v2928_v34  ;;  %v2926_v38 = vld [vmem:[%s3723_s20 + $0x8] sm:$0xff]  ;;  %v2925_v39 = vld [vmem:[%s3723_s20] sm:$0xff] }
 0x639   : > { %2874 = vmatmul.msk.bf16.vlgmr.msra.gmra.mxu1 %vm852_vm1, %v2290_v32 }
 0x63b   : > { %2479 = vmatpush.bf16.msra.mxu3 %v2927_v36 }
 0x63f   : > { %2480 = vmatpush.bf16.msra.mxu3 %v2926_v38 }
 0x643   : > { %2481 = vmatpush.bf16.msra.mxu3 %v2925_v39 }
 0x6b6   : > { %v2323_v35 = vpop.f32.mrf.mxu1 }
 0x6b7   : > { %v2324_v41 = vadd.f32 %v3108_v40, %v2323_v35 }
 0x6b9   : > { %v2328_v10 = vadd.f32 %v3157_v42, %v2324_v41 }
 0x6bb   : > { %v2332_v57 = vsel %vm852_vm1, %v2328_v10, 0.0 }
 0x6bc   : > { %2333 = vadd.xlane.f32.xlu1 %v2332_v57 }
 0x6be   : > { %v2325_v43 = vpop.f32.mrf.mxu1 }
 0x6bf   : > { %v2326_v44 = vadd.f32 %v3108_v40, %v2325_v43  ;;  %v3111_v40 = vld [vmem:[%s806_s8] ss:$0 sm:$0xff] }
 0x6c1   : > { %v2329_v45 = vadd.f32 %v3158_v51, %v2326_v44  ;;  %v3112_v44 = vld [vmem:[%s814_s29] ss:$0 sm:$0xff] }
 0x6c3   : > { %v2335_v46 = vsel %vm852_vm1, %v2329_v45, 0.0 }
 0x6c4   : > { %2336 = vadd.xlane.f32.xlu2 %v2335_v46 }
 0x72f   : > { %v2334_v58 = vpop.xlane.xlu1 %2333 }
 0x730   : > { %v2345_v59 = vmul.f32 %v4251_v56, %v2334_v58 }
 0x732   : > { %v2347_v53 = vsub.f32 %v2328_v10, %v2345_v59 }
 0x734   : > { %v2349_v61 = vmul.f32 %v2347_v53, %v2347_v53 }
 0x736   : > { %v2351_v1 = vsel %vm852_vm1, %v2349_v61, 0.0 }
 0x737   : > { %v2337_v3 = vpop.xlane.xlu2 %2336  ;;  %2352 = vadd.xlane.f32.xlu0 %v2351_v1 }
 0x738   : > { %v2346_v0 = vmul.f32 %v4251_v56, %v2337_v3 }
 0x73a   : > { %v2348_v4 = vsub.f32 %v2329_v45, %v2346_v0 }
 0x73c   : > { %v2350_v5 = vmul.f32 %v2348_v4, %v2348_v4 }
 0x73e   : > { %v2354_v7 = vsel %vm852_vm1, %v2350_v5, 0.0 }
 0x73f   : > { %2355 = vadd.xlane.f32.xlu0 %v2354_v7 }
 0x7aa   : > { %v2353_v18 = vpop.xlane.xlu0 %2352 }
 0x7ab   : > { %v2357_v48 = vmul.f32 %v2353_v18, %v4251_v56 }
 0x7ad   : > { %v2359_v12 = vadd.f32 1e-05, %v2357_v48 }
 0x7af   : > { %3149 = vrsqrt.f32 %v2359_v12  ;;  %vm2367_vm9 = vweird.f32 %v2359_v12 }
 0x7b2   : > { %v2356_v20 = vpop.xlane.xlu0 %2355 }
 0x7b3   : > { %v2358_v21 = vmul.f32 %v2356_v20, %v4251_v56 }
 0x7b5   : > { %v3150_v23 = vpop.eup %3149  ;;  %v2360_v22 = vadd.f32 1e-05, %v2358_v21 }
 0x7b6   : > { %v2362_v17 = vmul.f32 %v3150_v23, %v2359_v12  ;;  %vm2368_vm8 = vweird.f32 %v3150_v23 }
 0x7b7   : > { %3151 = vrsqrt.f32 %v2360_v22  ;;  %vm2369_vm10 = vmor %vm2367_vm9, %vm2368_vm8  ;;  %vm2377_vm12 = vweird.f32 %v2360_v22 }
 0x7b8   : > { %v2363_v15 = vmul.f32 %v3150_v23, %v2362_v17 }
 0x7ba   : > { %v2364_v9 = vmul.f32 0.5, %v2363_v15 }
 0x7bc   : > { %v2365_v33 = vsub.f32 1.5, %v2364_v9 }
 0x7bd   : > { %v3152_v24 = vpop.eup %3151 }
 0x7be   : > { %v2366_v25 = vmul.f32 %v3150_v23, %v2365_v33  ;;  %v2372_v60 = vmul.f32 %v3152_v24, %v2360_v22  ;;  %vm2378_vm11 = vweird.f32 %v3152_v24 }
 0x7bf   : > { %vm2379_vm13 = vmor %vm2377_vm12, %vm2378_vm11 }
 0x7c0   : > { %v2373_v37 = vmul.f32 %v3152_v24, %v2372_v60  ;;  %v2370_v29 = vsel %vm2369_vm10, %v3150_v23, %v2366_v25  ;;  %v3114_v60 = vld [vmem:[%s4392_s14] ss:$0 sm:$0xff] }
 0x7c1   : > { %v2381_v6 = vmul.f32 %v2370_v29, %v2347_v53 }
 0x7c2   : > { %v2374_v26 = vmul.f32 0.5, %v2373_v37 }
 0x7c3   : > { %v2386_v19 = vmul.f32 %v3109_v63, %v2381_v6 }
 0x7c4   : > { %v2375_v14 = vsub.f32 1.5, %v2374_v26 }
 0x7c5   : > { %v2391_v2 = vadd.f32 %v3110_v62, %v2386_v19 }
 0x7c6   : > { %v2376_v27 = vmul.f32 %v3152_v24, %v2375_v14 }
 0x7c8   : > { %v2380_v28 = vsel %vm2379_vm13, %v3152_v24, %v2376_v27  ;;  %v3113_v24 = vld [vmem:[%s817_s0] ss:$0 sm:$0xff]  ;;  %s4393_s0 = sld [smem:[#allocation35_spill]] (!%p2901_p3) }
 0x7c9   : > { %v2382_v30 = vmul.f32 %v2380_v28, %v2348_v4 }
 0x7cb   : > { %v2387_v8 = vmul.f32 %v3109_v63, %v2382_v30 }
 0x7cd   : > { %v2392_v13 = vadd.f32 %v3110_v62, %v2387_v8 }
 0x7cf   : > { %v2393_v31 = vpack.c.bf16 %v2392_v13, %v2391_v2 }
 0x7d1   : > { %2883 = vmatmul.msk.bf16.vlgmr.msra.gmra.mxu2 %vm852_vm1, %v2393_v31 }
 0x854   : > { %v2426_v32 = vpop.f32.mrf.mxu2 }
 0x855   : > { %v2427_v35 = vadd.f32 %v3111_v40, %v2426_v32 }
 0x857   : > { %v2431_v10 = vmax.f32 %v2427_v35, 0.0 }
 0x85c   : > { %v2428_v41 = vpop.f32.mrf.mxu2 }
 0x85d   : > { %v2429_v42 = vadd.f32 %v3111_v40, %v2428_v41 }
 0x85f   : > { %v2432_v57 = vmax.f32 %v2429_v42, 0.0 }
 0x861   : > { %v2433_v43 = vpack.c.bf16 %v2432_v57, %v2431_v10 }
 0x863   : > { %2900 = vmatmul.msk.bf16.vlgmr.msra.gmra.mxu3 %vm2470_vm14, %v2433_v43 }
 0x8e6   : > { %v2483_v51 = vpop.f32.mrf.mxu3 }
 0x8e7   : > { %v2484_v45 = vadd.f32 %v3112_v44, %v2483_v51 }
 0x8e9   : > { %v2488_v46 = vadd.f32 %v2484_v45, %v2391_v2 }
 0x8eb   : > { %v2492_v47 = vsel %vm852_vm1, %v2488_v46, 0.0 }
 0x8ec   : > { %2493 = vadd.xlane.f32.xlu0 %v2492_v47 }
 0x8ee   : > { %v2485_v49 = vpop.f32.mrf.mxu3 }
 0x8ef   : > { %v2486_v50 = vadd.f32 %v3112_v44, %v2485_v49 }
 0x8f1   : > { %v2489_v52 = vadd.f32 %v2486_v50, %v2392_v13 }
 0x8f3   : > { %v2495_v54 = vsel %vm852_vm1, %v2489_v52, 0.0 }
 0x8f4   : > { %2496 = vadd.xlane.f32.xlu1 %v2495_v54 }
 0x95f   : > { %v2494_v55 = vpop.xlane.xlu0 %2493 }
 0x960   : > { %v2498_v58 = vmul.f32 %v2494_v55, %v4251_v56 }
 0x962   : > { %v2500_v59 = vsub.f32 %v2488_v46, %v2498_v58 }
 0x964   : > { %v2502_v53 = vmul.f32 %v2500_v59, %v2500_v59 }
 0x966   : > { %v2504_v61 = vsel %vm852_vm1, %v2502_v53, 0.0 }
 0x967   : > { %v2497_v1 = vpop.xlane.xlu1 %2496  ;;  %2505 = vadd.xlane.f32.xlu0 %v2504_v61 }
 0x968   : > { %v2499_v3 = vmul.f32 %v2497_v1, %v4251_v56 }
 0x96a   : > { %v2501_v0 = vsub.f32 %v2489_v52, %v2499_v3 }
 0x96c   : > { %v2503_v4 = vmul.f32 %v2501_v0, %v2501_v0 }
 0x96e   : > { %v2507_v5 = vsel %vm852_vm1, %v2503_v4, 0.0 }
 0x96f   : > { %2508 = vadd.xlane.f32.xlu2 %v2507_v5 }
 0x9da   : > { %v2506_v7 = vpop.xlane.xlu0 %2505 }
 0x9db   : > { %v2510_v18 = vmul.f32 %v2506_v7, %v4251_v56 }
 0x9dd   : > { %v2512_v48 = vadd.f32 1e-05, %v2510_v18 }
 0x9df   : > { %3153 = vrsqrt.f32 %v2512_v48  ;;  %vm2520_vm0 = vweird.f32 %v2512_v48 }
 0x9e2   : > { %v2509_v12 = vpop.xlane.xlu2 %2508 }
 0x9e3   : > { %v2511_v11 = vmul.f32 %v2509_v12, %v4251_v56 }
 0x9e5   : > { %v3154_v16 = vpop.eup %3153  ;;  %v2513_v20 = vadd.f32 1e-05, %v2511_v11 }
 0x9e6   : > { %v2515_v21 = vmul.f32 %v3154_v16, %v2512_v48  ;;  %vm2521_vm15 = vweird.f32 %v3154_v16 }
 0x9e7   : > { %3155 = vrsqrt.f32 %v2513_v20  ;;  %vm2522_vm2 = vmor %vm2520_vm0, %vm2521_vm15  ;;  %vm2530_vm4 = vweird.f32 %v2513_v20 }
 0x9e8   : > { %v2516_v23 = vmul.f32 %v3154_v16, %v2515_v21 }
 0x9ea   : > { %v2517_v22 = vmul.f32 0.5, %v2516_v23 }
 0x9ec   : > { %v2518_v17 = vsub.f32 1.5, %v2517_v22 }
 0x9ed   : > { %v3156_v15 = vpop.eup %3155 }
 0x9ee   : > { %v2519_v9 = vmul.f32 %v3154_v16, %v2518_v17  ;;  %v2525_v33 = vmul.f32 %v3156_v15, %v2513_v20  ;;  %vm2531_vm3 = vweird.f32 %v3156_v15 }
 0x9ef   : > { %vm2532_vm5 = vmor %vm2530_vm4, %vm2531_vm3 }
 0x9f0   : > { %v2523_v56 = vsel %vm2522_vm2, %v3154_v16, %v2519_v9  ;;  %v2526_v25 = vmul.f32 %v3156_v15, %v2525_v33 }
 0x9f1   : > { %v2534_v37 = vmul.f32 %v2523_v56, %v2500_v59 }
 0x9f2   : > { %v2527_v29 = vmul.f32 0.5, %v2526_v25 }
 0x9f3   : > { %v2539_v26 = vmul.f32 %v3113_v24, %v2534_v37 }
 0x9f4   : > { %v2528_v14 = vsub.f32 1.5, %v2527_v29 }
 0x9f5   : > { %v2544_v63 = vadd.f32 %v3114_v60, %v2539_v26 }
 0x9f6   : > { %v2529_v6 = vmul.f32 %v3156_v15, %v2528_v14 }
 0x9f7   : > { %2546 = vst.msk [vmem:[#allocation2] sm:$0xff] %vm852_vm1, %v2544_v63 }
 0x9f8   : > { %v2533_v27 = vsel %vm2532_vm5, %v3156_v15, %v2529_v6 }
 0x9f9   : > { %v2535_v28 = vmul.f32 %v2533_v27, %v2501_v0 }
 0x9fb   : > { %v2540_v62 = vmul.f32 %v3113_v24, %v2535_v28  ;;  %2551 = sbr.rel (%p2901_p3) target bundleno = 2705 (0xa91), region = 116 }
 0x9fd   : > { %v2545_v19 = vadd.f32 %v3114_v60, %v2540_v62 }
 0x9ff   : > { %2547 = vst.msk [vmem:[#allocation2 + $0x8] sm:$0xff] %vm852_vm1, %v2545_v19 }
 0xa00   : > { %v2930_v30 = vld [vmem:[#allocation11 + $0x8] sm:$0xff]  ;;  %v2929_v8 = vld [vmem:[#allocation11] sm:$0xff]  ;;  %v2552_v2 = vpack.c.bf16 %v2545_v19, %v2544_v63  ;;  %v3159_v13 = vld [vmem:[%s4393_s0] ss:$0 sm:$0xff] }
 0xa01   : > { %2582 = vmatpush.bf16.msra.mxu0 %v2930_v30 }
 0xa05   : > { %2583 = vmatpush.bf16.msra.mxu0 %v2929_v8 }
 0xa08   : > { %2910 = vmatmul.msk.bf16.vlgmr.msra.gmra.mxu0 %vm852_vm1, %v2552_v2 }
 0xa85   : > { %v2585_v31 = vpop.f32.mrf.mxu0 }
 0xa86   : > { %v2586_v34 = vadd.f32 %v3159_v13, %v2585_v31 }
 0xa88   : > { %2590 = vst [vmem:[#allocation12] sm:$0xff] %v2586_v34 }
 0xa8d   : > { %v2587_v36 = vpop.f32.mrf.mxu0 }
 0xa8e   : > { %v2588_v38 = vadd.f32 %v3159_v13, %v2587_v36 }
 0xa90   : > { %2591 = vst [vmem:[#allocation12 + $0x8] sm:$0xff] %v2588_v38 }
 0xa91 PF: > { %p2980_p4 = scmp.eq.s32.totalorder %s3572_s27, 1  ;;  %s4394_s21 = sld [smem:[#allocation36_spill]] }
 0xa92   : > { %s3456_s26 = smov [#allocation12]   ;;  %s3457_s11 = smov 128  }
 0xa93   : > { %s2600_s19 = sshll.u32 %s3456_s26, 4  ;;  %s2601_s19 = int_to_ptr.vmem [resolvable:$true] %s2600_s19 }
 0xa97   : > { %s2602_s28 = sshll.u32 %s4394_s21, 4  ;;  %s2603_s28 = int_to_ptr.hbm [resolvable:$true] %s2602_s28 }
 0xa98   : > { %2950 = dma.vmem_to_hbm [thread:$0]  (%p2980_p4), %s2601_s19, 256, %s2603_s28, [#allocation5], %s3457_s11, %s3457_s11, %s3453_s17  }
 0xa99   : > { %3409 = dma.done.wait (%p2980_p4), [#allocation5], 256  }
 0xa9a   : > { %3411 = vsyncadd (%p2980_p4), [#allocation5], 4294967040 }
 0xa9b PF: > { %s4395_s23 = sld [smem:[#allocation19_spill]]  ;;  %s4399_s21 = smov %s3418_s22 }
 0xa9c   : > { %s4396_s30 = sld [smem:[#allocation18_spill]]  ;;  %s4401_s24 = smov %s3430_s25 }
 0xa9d   : > { %s4398_s27 = sld [smem:[#allocation20_spill]] }
 0xaa1   : > { %s29_s26 = sadd.s32 1, %s4395_s23   ;;  %s4397_s23 = sld [smem:[#allocation21_spill]] }
 0xaa2   : > { %p26_p5 = scmp.ge.s32.totalorder %s29_s26, 4   ;;  %s4400_s22 = smov %s4396_s30 }
 0xaa3   : > { %s4402_s25 = smov %s4398_s27 }
 0xaa4   :  { %28 = sbr.rel (!%p26_p5) target bundleno = 21 (0x15), region = 193 }
 0xaa9   :  { %2619 = vsyncpa [#allocation4], 1 }
 0xaaa   :  { %2621 = vsyncpa [#allocation4 + $0x1], 1 }
 0xaab   :  { %2622 = vsyncpa [#allocation7], 1 }
 0xaac   :  { %2623 = vsyncpa [#allocation5], 1 }
 0xaad   :  { %2625 = vsyncpa [#allocation5 + $0x1], 1 }

</bundles_post_ra>
